<compile_context>
chip_gen: v5e
topology: v5e:2x2
jax: 0.10.0
libtpu: 0.0.40
codegen_flags: <defaults>
</compile_context>

<pallas_src>
import jax
import jax.numpy as jnp
from jax.experimental import pallas as pl
from jax.experimental.pallas import tpu as pltpu


def lstm_kernel(x_ref, wih_ref, whh_ref, wl_ref, out_ref, gx_ref):
    """Single invocation: full LSTM recurrence + linear head, all in VMEM.

    Shapes (padded):
      x_ref    : (S*Bp, I+1)     time-major, batch-padded, flattened, +ones col
      wih_ref  : (I+1, 4*Hp)     [W_ih^T ; (b_ih+b_hh)]  gate order [i,f,o,g]
      whh_ref  : (Hp, 4*Hp)      W_hh^T                  gate order [i,f,o,g]
      wl_ref   : (Hp+8, Op)      rows 0:Hp = W_lin^T (lane-padded), row Hp = b_lin
      out_ref  : (Bp, Op)
      gx_ref   : (S*Bp, 4*Hp)    VMEM scratch for the hoisted input projection
    """
    SB = x_ref.shape[0]
    Hp = whh_ref.shape[0]
    Bp = out_ref.shape[0]
    S = SB // Bp

    # ---- Hoisted, time-parallel input projection (bias folded in via the ones
    # column): one MXU matmul for all timesteps, written to VMEM scratch so it
    # never sits in vregs across the recurrence. ----
    gx_ref[...] = jnp.dot(x_ref[...], wih_ref[...],
                          preferred_element_type=jnp.float32)      # (S*Bp, 4Hp)

    h = jnp.zeros((Bp, Hp), jnp.float32)
    c = jnp.zeros((Bp, Hp), jnp.float32)

    # ---- Recurrence: S is small & static -> fully unrolled; only h @ W_hh^T is
    # sequential.  Gate slices are whole 128-lane tiles (Hp = 128). ----
    for t in range(S):
        gates = gx_ref[t * Bp:(t + 1) * Bp, :] + jnp.dot(
            h, whh_ref[...], preferred_element_type=jnp.float32)   # (Bp, 4Hp)
        # sigmoid(x) = 0.5*tanh(0.5*x) + 0.5  (single EUP op per vreg) on the
        # contiguous [i, f, o] block; tanh on the trailing g block.
        sig = 0.5 * jnp.tanh(0.5 * gates[:, :3 * Hp]) + 0.5
        i = sig[:, 0 * Hp:1 * Hp]
        f = sig[:, 1 * Hp:2 * Hp]
        o = sig[:, 2 * Hp:3 * Hp]
        g = jnp.tanh(gates[:, 3 * Hp:4 * Hp])
        c = f * c + i * g
        h = o * jnp.tanh(c)

    # ---- Linear head on the final hidden state (lane-dense, unmasked store).
    wl = wl_ref[...]                                               # (Hp+8, Op)
    out_ref[...] = (jnp.dot(h, wl[:Hp, :], preferred_element_type=jnp.float32)
                    + wl[Hp:Hp + 1, :]).astype(out_ref.dtype)


def lstm_forward(x_bsi, w_ih, w_hh, b_ih, b_hh, w_lin, b_lin):
    """x_bsi: (B, S, I) float32 (PyTorch batch_first layout).  Returns (B, O)."""
    B, S, I = x_bsi.shape
    H = w_hh.shape[1]
    O = w_lin.shape[0]

    Hp = max(128, H)    # gate slices land on 128-lane vreg boundaries
    Bp = max(8, B)      # fill the f32 sublane count
    Op = max(128, O)    # lane-dense output / linear-head operands

    # ---- wrapper-side layout / padding glue (cheap XLA ops, zero-padded so the
    # padded lanes of h/c stay exactly 0 and results are unchanged) ----
    x_sbi = jnp.transpose(x_bsi, (1, 0, 2))                        # (S, B, I)
    x_sbi = jnp.pad(x_sbi, ((0, 0), (0, Bp - B), (0, 0)))          # (S, Bp, I)
    x2d = x_sbi.reshape(S * Bp, I)                                 # (S*Bp, I)
    x_aug = jnp.concatenate(                                       # (S*Bp, I+1)
        [x2d, jnp.ones((S * Bp, 1), x2d.dtype)], axis=1)

    def reorder_pad_gates(w):
        """(4H, ...) -> (4Hp, ...): PyTorch gate blocks [i,f,g,o] reordered to
        [i,f,o,g] and each padded to Hp rows."""
        pads = [(0, Hp - H)] + [(0, 0)] * (w.ndim - 1)
        return jnp.concatenate(
            [jnp.pad(w[k * H:(k + 1) * H], pads) for k in (0, 1, 3, 2)], axis=0)

    b = b_ih + b_hh                                                # (4H,)
    wih_g = reorder_pad_gates(w_ih)                                # (4Hp, I)
    b_g = reorder_pad_gates(b).reshape(1, 4 * Hp)                  # (1, 4Hp)
    wih_b = jnp.concatenate([jnp.transpose(wih_g), b_g], axis=0)   # (I+1, 4Hp)

    whh_p = jnp.transpose(reorder_pad_gates(
        jnp.pad(w_hh, ((0, 0), (0, Hp - H)))))                     # (Hp, 4Hp)

    # Linear head packed into one lane-dense operand: W_lin^T on rows 0:Hp,
    # b_lin on row Hp, zero rows to the next sublane multiple.
    wlin_t = jnp.pad(jnp.transpose(w_lin), ((0, Hp - H), (0, Op - O)))   # (Hp, Op)
    blin_r = jnp.pad(b_lin.reshape(1, O), ((0, 0), (0, Op - O)))         # (1, Op)
    wl_packed = jnp.concatenate(
        [wlin_t, blin_r, jnp.zeros((7, Op), jnp.float32)], axis=0)       # (Hp+8, Op)

    out_p = pl.pallas_call(
        lstm_kernel,
        out_shape=jax.ShapeDtypeStruct((Bp, Op), jnp.float32),
        in_specs=[pl.BlockSpec(memory_space=pltpu.MemorySpace.VMEM)
                  for _ in range(4)],
        out_specs=pl.BlockSpec(memory_space=pltpu.MemorySpace.VMEM),
        scratch_shapes=[pltpu.VMEM((S * Bp, 4 * Hp), jnp.float32)],
    )(x_aug, wih_b, whh_p, wl_packed)

    return out_p[:B, :O]


def lstm_reference(x_bsi, w_ih, w_hh, b_ih, b_hh, w_lin, b_lin):
    """Pure-JAX reference (matches PyTorch nn.LSTM gate order i,f,g,o)."""
    B, S, I = x_bsi.shape
    H = w_hh.shape[1]
    h = jnp.zeros((B, H), jnp.float32)
    c = jnp.zeros((B, H), jnp.float32)

    def step(carry, x_t):
        h, c = carry
        gates = x_t @ w_ih.T + b_ih + h @ w_hh.T + b_hh
        i = jax.nn.sigmoid(gates[:, 0 * H:1 * H])
        f = jax.nn.sigmoid(gates[:, 1 * H:2 * H])
        g = jnp.tanh(gates[:, 2 * H:3 * H])
        o = jax.nn.sigmoid(gates[:, 3 * H:4 * H])
        c = f * c + i * g
        h = o * jnp.tanh(c)
        return (h, c), None

    (h, c), _ = jax.lax.scan(step, (h, c), jnp.transpose(x_bsi, (1, 0, 2)))
    return h @ w_lin.T + b_lin


if __name__ == "__main__":
    # Module hyperparameters (from __init__)
    INPUT_SIZE, HIDDEN_SIZE, OUTPUT_SIZE = 5, 64, 1
    BATCH, SEQ = 2, 8

    key = jax.random.PRNGKey(0)
    ks = jax.random.split(key, 8)
    bound = 1.0 / (HIDDEN_SIZE ** 0.5)   # PyTorch default uniform init range

    # nn.LSTM parameters (gate order i, f, g, o)
    w_ih = jax.random.uniform(ks[0], (4 * HIDDEN_SIZE, INPUT_SIZE),
                              jnp.float32, -bound, bound)
    w_hh = jax.random.uniform(ks[1], (4 * HIDDEN_SIZE, HIDDEN_SIZE),
                              jnp.float32, -bound, bound)
    b_ih = jax.random.uniform(ks[2], (4 * HIDDEN_SIZE,), jnp.float32, -bound, bound)
    b_hh = jax.random.uniform(ks[3], (4 * HIDDEN_SIZE,), jnp.float32, -bound, bound)

    # nn.Linear parameters
    w_lin = jax.random.uniform(ks[4], (OUTPUT_SIZE, HIDDEN_SIZE),
                               jnp.float32, -bound, bound)
    b_lin = jax.random.uniform(ks[5], (OUTPUT_SIZE,), jnp.float32, -bound, bound)

    # Input (batch_first, as the PyTorch module expects)
    x = jax.random.normal(ks[6], (BATCH, SEQ, INPUT_SIZE), jnp.float32)

    y = lstm_forward(x, w_ih, w_hh, b_ih, b_hh, w_lin, b_lin)
    y = jax.block_until_ready(y)

    y_ref = lstm_reference(x, w_ih, w_hh, b_ih, b_hh, w_lin, b_lin)
    assert y.shape == (BATCH, OUTPUT_SIZE), y.shape
    assert jnp.allclose(y, y_ref, atol=1e-5, rtol=1e-5), (y, y_ref)

    print("KERNEL_OK")
</pallas_src>

<mosaic_0001>
module attributes {stable_mosaic.version = 11 : i64} {
  func.func @lstm_kernel(%arg0: memref<64x6xf32, #tpu.memory_space<vmem>>, %arg1: memref<6x512xf32, #tpu.memory_space<vmem>>, %arg2: memref<128x512xf32, #tpu.memory_space<vmem>>, %arg3: memref<136x128xf32, #tpu.memory_space<vmem>>, %arg4: memref<8x128xf32, #tpu.memory_space<vmem>>, %arg5: memref<64x512xf32, #tpu.memory_space<vmem>>) attributes {dimension_semantics = [], scalar_prefetch = 0 : i64, scratch_operands = 1 : i64, tpu.core_type = #tpu.core_type<tc>} {
    %c0 = arith.constant 0 : index
    %c0_0 = arith.constant 0 : index
    %0 = vector.load %arg0[%c0, %c0_0] : memref<64x6xf32, #tpu.memory_space<vmem>>, vector<64x6xf32>
    %c0_1 = arith.constant 0 : index
    %c0_2 = arith.constant 0 : index
    %1 = vector.load %arg1[%c0_1, %c0_2] : memref<6x512xf32, #tpu.memory_space<vmem>>, vector<6x512xf32>
    %cst = arith.constant dense<0.000000e+00> : vector<64x512xf32>
    %2 = tpu.matmul %0, %1, %cst {dimension_numbers = #tpu.dot_dimension_numbers<[1], [0], [0], [1], [0, 0, 1, 1], [], []>} : vector<64x6xf32>, vector<6x512xf32>, vector<64x512xf32> -> vector<64x512xf32>
    %c0_3 = arith.constant 0 : index
    %c0_4 = arith.constant 0 : index
    %3 = vector.load %arg5[%c0_3, %c0_4] : memref<64x512xf32, #tpu.memory_space<vmem>>, vector<64x512xf32>
    tpu.vector_store %arg5[%c0_3, %c0_4], %2 {strides = array<i32>} : memref<64x512xf32, #tpu.memory_space<vmem>>, vector<64x512xf32>,
    %cst_5 = arith.constant 0.000000e+00 : f32
    %4 = vector.broadcast %cst_5 : f32 to vector<8x128xf32>
    %cst_6 = arith.constant 0.000000e+00 : f32
    %5 = vector.broadcast %cst_6 : f32 to vector<8x128xf32>
    %c0_7 = arith.constant 0 : index
    %c0_8 = arith.constant 0 : index
    %6 = vector.load %arg5[%c0_7, %c0_8] : memref<64x512xf32, #tpu.memory_space<vmem>>, vector<8x512xf32>
    %c0_9 = arith.constant 0 : index
    %c0_10 = arith.constant 0 : index
    %7 = vector.load %arg2[%c0_9, %c0_10] : memref<128x512xf32, #tpu.memory_space<vmem>>, vector<128x512xf32>
    %cst_11 = arith.constant dense<0.000000e+00> : vector<8x512xf32>
    %8 = tpu.matmul %4, %7, %cst_11 {dimension_numbers = #tpu.dot_dimension_numbers<[1], [0], [0], [1], [0, 0, 1, 1], [], []>} : vector<8x128xf32>, vector<128x512xf32>, vector<8x512xf32> -> vector<8x512xf32>
    %9 = arith.addf %6, %8 : vector<8x512xf32>
    %10 = vector.extract_strided_slice %9 {offsets = [0, 0], sizes = [8, 384], strides = [1, 1]} : vector<8x512xf32> to vector<8x384xf32>
    %cst_12 = arith.constant 5.000000e-01 : f32
    %11 = vector.broadcast %cst_12 : f32 to vector<8x384xf32>
    %12 = arith.mulf %11, %10 : vector<8x384xf32>
    %13 = math.tanh %12 : vector<8x384xf32>
    %cst_13 = arith.constant 5.000000e-01 : f32
    %14 = vector.broadcast %cst_13 : f32 to vector<8x384xf32>
    %15 = arith.mulf %14, %13 : vector<8x384xf32>
    %cst_14 = arith.constant 5.000000e-01 : f32
    %16 = vector.broadcast %cst_14 : f32 to vector<8x384xf32>
    %17 = arith.addf %15, %16 : vector<8x384xf32>
    %18 = vector.extract_strided_slice %17 {offsets = [0, 0], sizes = [8, 128], strides = [1, 1]} : vector<8x384xf32> to vector<8x128xf32>
    %19 = vector.extract_strided_slice %17 {offsets = [0, 128], sizes = [8, 128], strides = [1, 1]} : vector<8x384xf32> to vector<8x128xf32>
    %20 = vector.extract_strided_slice %17 {offsets = [0, 256], sizes = [8, 128], strides = [1, 1]} : vector<8x384xf32> to vector<8x128xf32>
    %21 = vector.extract_strided_slice %9 {offsets = [0, 384], sizes = [8, 128], strides = [1, 1]} : vector<8x512xf32> to vector<8x128xf32>
    %22 = math.tanh %21 : vector<8x128xf32>
    %23 = arith.mulf %19, %5 : vector<8x128xf32>
    %24 = arith.mulf %18, %22 : vector<8x128xf32>
    %25 = arith.addf %23, %24 : vector<8x128xf32>
    %26 = math.tanh %25 : vector<8x128xf32>
    %27 = arith.mulf %20, %26 : vector<8x128xf32>
    %c8 = arith.constant 8 : index
    %c0_15 = arith.constant 0 : index
    %28 = vector.load %arg5[%c8, %c0_15] : memref<64x512xf32, #tpu.memory_space<vmem>>, vector<8x512xf32>
    %c0_16 = arith.constant 0 : index
    %c0_17 = arith.constant 0 : index
    %29 = vector.load %arg2[%c0_16, %c0_17] : memref<128x512xf32, #tpu.memory_space<vmem>>, vector<128x512xf32>
    %cst_18 = arith.constant dense<0.000000e+00> : vector<8x512xf32>
    %30 = tpu.matmul %27, %29, %cst_18 {dimension_numbers = #tpu.dot_dimension_numbers<[1], [0], [0], [1], [0, 0, 1, 1], [], []>} : vector<8x128xf32>, vector<128x512xf32>, vector<8x512xf32> -> vector<8x512xf32>
    %31 = arith.addf %28, %30 : vector<8x512xf32>
    %32 = vector.extract_strided_slice %31 {offsets = [0, 0], sizes = [8, 384], strides = [1, 1]} : vector<8x512xf32> to vector<8x384xf32>
    %cst_19 = arith.constant 5.000000e-01 : f32
    %33 = vector.broadcast %cst_19 : f32 to vector<8x384xf32>
    %34 = arith.mulf %33, %32 : vector<8x384xf32>
    %35 = math.tanh %34 : vector<8x384xf32>
    %cst_20 = arith.constant 5.000000e-01 : f32
    %36 = vector.broadcast %cst_20 : f32 to vector<8x384xf32>
    %37 = arith.mulf %36, %35 : vector<8x384xf32>
    %cst_21 = arith.constant 5.000000e-01 : f32
    %38 = vector.broadcast %cst_21 : f32 to vector<8x384xf32>
    %39 = arith.addf %37, %38 : vector<8x384xf32>
    %40 = vector.extract_strided_slice %39 {offsets = [0, 0], sizes = [8, 128], strides = [1, 1]} : vector<8x384xf32> to vector<8x128xf32>
    %41 = vector.extract_strided_slice %39 {offsets = [0, 128], sizes = [8, 128], strides = [1, 1]} : vector<8x384xf32> to vector<8x128xf32>
    %42 = vector.extract_strided_slice %39 {offsets = [0, 256], sizes = [8, 128], strides = [1, 1]} : vector<8x384xf32> to vector<8x128xf32>
    %43 = vector.extract_strided_slice %31 {offsets = [0, 384], sizes = [8, 128], strides = [1, 1]} : vector<8x512xf32> to vector<8x128xf32>
    %44 = math.tanh %43 : vector<8x128xf32>
    %45 = arith.mulf %41, %25 : vector<8x128xf32>
    %46 = arith.mulf %40, %44 : vector<8x128xf32>
    %47 = arith.addf %45, %46 : vector<8x128xf32>
    %48 = math.tanh %47 : vector<8x128xf32>
    %49 = arith.mulf %42, %48 : vector<8x128xf32>
    %c16 = arith.constant 16 : index
    %c0_22 = arith.constant 0 : index
    %50 = vector.load %arg5[%c16, %c0_22] : memref<64x512xf32, #tpu.memory_space<vmem>>, vector<8x512xf32>
    %c0_23 = arith.constant 0 : index
    %c0_24 = arith.constant 0 : index
    %51 = vector.load %arg2[%c0_23, %c0_24] : memref<128x512xf32, #tpu.memory_space<vmem>>, vector<128x512xf32>
    %cst_25 = arith.constant dense<0.000000e+00> : vector<8x512xf32>
    %52 = tpu.matmul %49, %51, %cst_25 {dimension_numbers = #tpu.dot_dimension_numbers<[1], [0], [0], [1], [0, 0, 1, 1], [], []>} : vector<8x128xf32>, vector<128x512xf32>, vector<8x512xf32> -> vector<8x512xf32>
    %53 = arith.addf %50, %52 : vector<8x512xf32>
    %54 = vector.extract_strided_slice %53 {offsets = [0, 0], sizes = [8, 384], strides = [1, 1]} : vector<8x512xf32> to vector<8x384xf32>
    %cst_26 = arith.constant 5.000000e-01 : f32
    %55 = vector.broadcast %cst_26 : f32 to vector<8x384xf32>
    %56 = arith.mulf %55, %54 : vector<8x384xf32>
    %57 = math.tanh %56 : vector<8x384xf32>
    %cst_27 = arith.constant 5.000000e-01 : f32
    %58 = vector.broadcast %cst_27 : f32 to vector<8x384xf32>
    %59 = arith.mulf %58, %57 : vector<8x384xf32>
    %cst_28 = arith.constant 5.000000e-01 : f32
    %60 = vector.broadcast %cst_28 : f32 to vector<8x384xf32>
    %61 = arith.addf %59, %60 : vector<8x384xf32>
    %62 = vector.extract_strided_slice %61 {offsets = [0, 0], sizes = [8, 128], strides = [1, 1]} : vector<8x384xf32> to vector<8x128xf32>
    %63 = vector.extract_strided_slice %61 {offsets = [0, 128], sizes = [8, 128], strides = [1, 1]} : vector<8x384xf32> to vector<8x128xf32>
    %64 = vector.extract_strided_slice %61 {offsets = [0, 256], sizes = [8, 128], strides = [1, 1]} : vector<8x384xf32> to vector<8x128xf32>
    %65 = vector.extract_strided_slice %53 {offsets = [0, 384], sizes = [8, 128], strides = [1, 1]} : vector<8x512xf32> to vector<8x128xf32>
    %66 = math.tanh %65 : vector<8x128xf32>
    %67 = arith.mulf %63, %47 : vector<8x128xf32>
    %68 = arith.mulf %62, %66 : vector<8x128xf32>
    %69 = arith.addf %67, %68 : vector<8x128xf32>
    %70 = math.tanh %69 : vector<8x128xf32>
    %71 = arith.mulf %64, %70 : vector<8x128xf32>
    %c24 = arith.constant 24 : index
    %c0_29 = arith.constant 0 : index
    %72 = vector.load %arg5[%c24, %c0_29] : memref<64x512xf32, #tpu.memory_space<vmem>>, vector<8x512xf32>
    %c0_30 = arith.constant 0 : index
    %c0_31 = arith.constant 0 : index
    %73 = vector.load %arg2[%c0_30, %c0_31] : memref<128x512xf32, #tpu.memory_space<vmem>>, vector<128x512xf32>
    %cst_32 = arith.constant dense<0.000000e+00> : vector<8x512xf32>
    %74 = tpu.matmul %71, %73, %cst_32 {dimension_numbers = #tpu.dot_dimension_numbers<[1], [0], [0], [1], [0, 0, 1, 1], [], []>} : vector<8x128xf32>, vector<128x512xf32>, vector<8x512xf32> -> vector<8x512xf32>
    %75 = arith.addf %72, %74 : vector<8x512xf32>
    %76 = vector.extract_strided_slice %75 {offsets = [0, 0], sizes = [8, 384], strides = [1, 1]} : vector<8x512xf32> to vector<8x384xf32>
    %cst_33 = arith.constant 5.000000e-01 : f32
    %77 = vector.broadcast %cst_33 : f32 to vector<8x384xf32>
    %78 = arith.mulf %77, %76 : vector<8x384xf32>
    %79 = math.tanh %78 : vector<8x384xf32>
    %cst_34 = arith.constant 5.000000e-01 : f32
    %80 = vector.broadcast %cst_34 : f32 to vector<8x384xf32>
    %81 = arith.mulf %80, %79 : vector<8x384xf32>
    %cst_35 = arith.constant 5.000000e-01 : f32
    %82 = vector.broadcast %cst_35 : f32 to vector<8x384xf32>
    %83 = arith.addf %81, %82 : vector<8x384xf32>
    %84 = vector.extract_strided_slice %83 {offsets = [0, 0], sizes = [8, 128], strides = [1, 1]} : vector<8x384xf32> to vector<8x128xf32>
    %85 = vector.extract_strided_slice %83 {offsets = [0, 128], sizes = [8, 128], strides = [1, 1]} : vector<8x384xf32> to vector<8x128xf32>
    %86 = vector.extract_strided_slice %83 {offsets = [0, 256], sizes = [8, 128], strides = [1, 1]} : vector<8x384xf32> to vector<8x128xf32>
    %87 = vector.extract_strided_slice %75 {offsets = [0, 384], sizes = [8, 128], strides = [1, 1]} : vector<8x512xf32> to vector<8x128xf32>
    %88 = math.tanh %87 : vector<8x128xf32>
    %89 = arith.mulf %85, %69 : vector<8x128xf32>
    %90 = arith.mulf %84, %88 : vector<8x128xf32>
    %91 = arith.addf %89, %90 : vector<8x128xf32>
    %92 = math.tanh %91 : vector<8x128xf32>
    %93 = arith.mulf %86, %92 : vector<8x128xf32>
    %c32 = arith.constant 32 : index
    %c0_36 = arith.constant 0 : index
    %94 = vector.load %arg5[%c32, %c0_36] : memref<64x512xf32, #tpu.memory_space<vmem>>, vector<8x512xf32>
    %c0_37 = arith.constant 0 : index
    %c0_38 = arith.constant 0 : index
    %95 = vector.load %arg2[%c0_37, %c0_38] : memref<128x512xf32, #tpu.memory_space<vmem>>, vector<128x512xf32>
    %cst_39 = arith.constant dense<0.000000e+00> : vector<8x512xf32>
    %96 = tpu.matmul %93, %95, %cst_39 {dimension_numbers = #tpu.dot_dimension_numbers<[1], [0], [0], [1], [0, 0, 1, 1], [], []>} : vector<8x128xf32>, vector<128x512xf32>, vector<8x512xf32> -> vector<8x512xf32>
    %97 = arith.addf %94, %96 : vector<8x512xf32>
    %98 = vector.extract_strided_slice %97 {offsets = [0, 0], sizes = [8, 384], strides = [1, 1]} : vector<8x512xf32> to vector<8x384xf32>
    %cst_40 = arith.constant 5.000000e-01 : f32
    %99 = vector.broadcast %cst_40 : f32 to vector<8x384xf32>
    %100 = arith.mulf %99, %98 : vector<8x384xf32>
    %101 = math.tanh %100 : vector<8x384xf32>
    %cst_41 = arith.constant 5.000000e-01 : f32
    %102 = vector.broadcast %cst_41 : f32 to vector<8x384xf32>
    %103 = arith.mulf %102, %101 : vector<8x384xf32>
    %cst_42 = arith.constant 5.000000e-01 : f32
    %104 = vector.broadcast %cst_42 : f32 to vector<8x384xf32>
    %105 = arith.addf %103, %104 : vector<8x384xf32>
    %106 = vector.extract_strided_slice %105 {offsets = [0, 0], sizes = [8, 128], strides = [1, 1]} : vector<8x384xf32> to vector<8x128xf32>
    %107 = vector.extract_strided_slice %105 {offsets = [0, 128], sizes = [8, 128], strides = [1, 1]} : vector<8x384xf32> to vector<8x128xf32>
    %108 = vector.extract_strided_slice %105 {offsets = [0, 256], sizes = [8, 128], strides = [1, 1]} : vector<8x384xf32> to vector<8x128xf32>
    %109 = vector.extract_strided_slice %97 {offsets = [0, 384], sizes = [8, 128], strides = [1, 1]} : vector<8x512xf32> to vector<8x128xf32>
    %110 = math.tanh %109 : vector<8x128xf32>
    %111 = arith.mulf %107, %91 : vector<8x128xf32>
    %112 = arith.mulf %106, %110 : vector<8x128xf32>
    %113 = arith.addf %111, %112 : vector<8x128xf32>
    %114 = math.tanh %113 : vector<8x128xf32>
    %115 = arith.mulf %108, %114 : vector<8x128xf32>
    %c40 = arith.constant 40 : index
    %c0_43 = arith.constant 0 : index
    %116 = vector.load %arg5[%c40, %c0_43] : memref<64x512xf32, #tpu.memory_space<vmem>>, vector<8x512xf32>
    %c0_44 = arith.constant 0 : index
    %c0_45 = arith.constant 0 : index
    %117 = vector.load %arg2[%c0_44, %c0_45] : memref<128x512xf32, #tpu.memory_space<vmem>>, vector<128x512xf32>
    %cst_46 = arith.constant dense<0.000000e+00> : vector<8x512xf32>
    %118 = tpu.matmul %115, %117, %cst_46 {dimension_numbers = #tpu.dot_dimension_numbers<[1], [0], [0], [1], [0, 0, 1, 1], [], []>} : vector<8x128xf32>, vector<128x512xf32>, vector<8x512xf32> -> vector<8x512xf32>
    %119 = arith.addf %116, %118 : vector<8x512xf32>
    %120 = vector.extract_strided_slice %119 {offsets = [0, 0], sizes = [8, 384], strides = [1, 1]} : vector<8x512xf32> to vector<8x384xf32>
    %cst_47 = arith.constant 5.000000e-01 : f32
    %121 = vector.broadcast %cst_47 : f32 to vector<8x384xf32>
    %122 = arith.mulf %121, %120 : vector<8x384xf32>
    %123 = math.tanh %122 : vector<8x384xf32>
    %cst_48 = arith.constant 5.000000e-01 : f32
    %124 = vector.broadcast %cst_48 : f32 to vector<8x384xf32>
    %125 = arith.mulf %124, %123 : vector<8x384xf32>
    %cst_49 = arith.constant 5.000000e-01 : f32
    %126 = vector.broadcast %cst_49 : f32 to vector<8x384xf32>
    %127 = arith.addf %125, %126 : vector<8x384xf32>
    %128 = vector.extract_strided_slice %127 {offsets = [0, 0], sizes = [8, 128], strides = [1, 1]} : vector<8x384xf32> to vector<8x128xf32>
    %129 = vector.extract_strided_slice %127 {offsets = [0, 128], sizes = [8, 128], strides = [1, 1]} : vector<8x384xf32> to vector<8x128xf32>
    %130 = vector.extract_strided_slice %127 {offsets = [0, 256], sizes = [8, 128], strides = [1, 1]} : vector<8x384xf32> to vector<8x128xf32>
    %131 = vector.extract_strided_slice %119 {offsets = [0, 384], sizes = [8, 128], strides = [1, 1]} : vector<8x512xf32> to vector<8x128xf32>
    %132 = math.tanh %131 : vector<8x128xf32>
    %133 = arith.mulf %129, %113 : vector<8x128xf32>
    %134 = arith.mulf %128, %132 : vector<8x128xf32>
    %135 = arith.addf %133, %134 : vector<8x128xf32>
    %136 = math.tanh %135 : vector<8x128xf32>
    %137 = arith.mulf %130, %136 : vector<8x128xf32>
    %c48 = arith.constant 48 : index
    %c0_50 = arith.constant 0 : index
    %138 = vector.load %arg5[%c48, %c0_50] : memref<64x512xf32, #tpu.memory_space<vmem>>, vector<8x512xf32>
    %c0_51 = arith.constant 0 : index
    %c0_52 = arith.constant 0 : index
    %139 = vector.load %arg2[%c0_51, %c0_52] : memref<128x512xf32, #tpu.memory_space<vmem>>, vector<128x512xf32>
    %cst_53 = arith.constant dense<0.000000e+00> : vector<8x512xf32>
    %140 = tpu.matmul %137, %139, %cst_53 {dimension_numbers = #tpu.dot_dimension_numbers<[1], [0], [0], [1], [0, 0, 1, 1], [], []>} : vector<8x128xf32>, vector<128x512xf32>, vector<8x512xf32> -> vector<8x512xf32>
    %141 = arith.addf %138, %140 : vector<8x512xf32>
    %142 = vector.extract_strided_slice %141 {offsets = [0, 0], sizes = [8, 384], strides = [1, 1]} : vector<8x512xf32> to vector<8x384xf32>
    %cst_54 = arith.constant 5.000000e-01 : f32
    %143 = vector.broadcast %cst_54 : f32 to vector<8x384xf32>
    %144 = arith.mulf %143, %142 : vector<8x384xf32>
    %145 = math.tanh %144 : vector<8x384xf32>
    %cst_55 = arith.constant 5.000000e-01 : f32
    %146 = vector.broadcast %cst_55 : f32 to vector<8x384xf32>
    %147 = arith.mulf %146, %145 : vector<8x384xf32>
    %cst_56 = arith.constant 5.000000e-01 : f32
    %148 = vector.broadcast %cst_56 : f32 to vector<8x384xf32>
    %149 = arith.addf %147, %148 : vector<8x384xf32>
    %150 = vector.extract_strided_slice %149 {offsets = [0, 0], sizes = [8, 128], strides = [1, 1]} : vector<8x384xf32> to vector<8x128xf32>
    %151 = vector.extract_strided_slice %149 {offsets = [0, 128], sizes = [8, 128], strides = [1, 1]} : vector<8x384xf32> to vector<8x128xf32>
    %152 = vector.extract_strided_slice %149 {offsets = [0, 256], sizes = [8, 128], strides = [1, 1]} : vector<8x384xf32> to vector<8x128xf32>
    %153 = vector.extract_strided_slice %141 {offsets = [0, 384], sizes = [8, 128], strides = [1, 1]} : vector<8x512xf32> to vector<8x128xf32>
    %154 = math.tanh %153 : vector<8x128xf32>
    %155 = arith.mulf %151, %135 : vector<8x128xf32>
    %156 = arith.mulf %150, %154 : vector<8x128xf32>
    %157 = arith.addf %155, %156 : vector<8x128xf32>
    %158 = math.tanh %157 : vector<8x128xf32>
    %159 = arith.mulf %152, %158 : vector<8x128xf32>
    %c56 = arith.constant 56 : index
    %c0_57 = arith.constant 0 : index
    %160 = vector.load %arg5[%c56, %c0_57] : memref<64x512xf32, #tpu.memory_space<vmem>>, vector<8x512xf32>
    %c0_58 = arith.constant 0 : index
    %c0_59 = arith.constant 0 : index
    %161 = vector.load %arg2[%c0_58, %c0_59] : memref<128x512xf32, #tpu.memory_space<vmem>>, vector<128x512xf32>
    %cst_60 = arith.constant dense<0.000000e+00> : vector<8x512xf32>
    %162 = tpu.matmul %159, %161, %cst_60 {dimension_numbers = #tpu.dot_dimension_numbers<[1], [0], [0], [1], [0, 0, 1, 1], [], []>} : vector<8x128xf32>, vector<128x512xf32>, vector<8x512xf32> -> vector<8x512xf32>
    %163 = arith.addf %160, %162 : vector<8x512xf32>
    %164 = vector.extract_strided_slice %163 {offsets = [0, 0], sizes = [8, 384], strides = [1, 1]} : vector<8x512xf32> to vector<8x384xf32>
    %cst_61 = arith.constant 5.000000e-01 : f32
    %165 = vector.broadcast %cst_61 : f32 to vector<8x384xf32>
    %166 = arith.mulf %165, %164 : vector<8x384xf32>
    %167 = math.tanh %166 : vector<8x384xf32>
    %cst_62 = arith.constant 5.000000e-01 : f32
    %168 = vector.broadcast %cst_62 : f32 to vector<8x384xf32>
    %169 = arith.mulf %168, %167 : vector<8x384xf32>
    %cst_63 = arith.constant 5.000000e-01 : f32
    %170 = vector.broadcast %cst_63 : f32 to vector<8x384xf32>
    %171 = arith.addf %169, %170 : vector<8x384xf32>
    %172 = vector.extract_strided_slice %171 {offsets = [0, 0], sizes = [8, 128], strides = [1, 1]} : vector<8x384xf32> to vector<8x128xf32>
    %173 = vector.extract_strided_slice %171 {offsets = [0, 128], sizes = [8, 128], strides = [1, 1]} : vector<8x384xf32> to vector<8x128xf32>
    %174 = vector.extract_strided_slice %171 {offsets = [0, 256], sizes = [8, 128], strides = [1, 1]} : vector<8x384xf32> to vector<8x128xf32>
    %175 = vector.extract_strided_slice %163 {offsets = [0, 384], sizes = [8, 128], strides = [1, 1]} : vector<8x512xf32> to vector<8x128xf32>
    %176 = math.tanh %175 : vector<8x128xf32>
    %177 = arith.mulf %173, %157 : vector<8x128xf32>
    %178 = arith.mulf %172, %176 : vector<8x128xf32>
    %179 = arith.addf %177, %178 : vector<8x128xf32>
    %180 = math.tanh %179 : vector<8x128xf32>
    %181 = arith.mulf %174, %180 : vector<8x128xf32>
    %c0_64 = arith.constant 0 : index
    %c0_65 = arith.constant 0 : index
    %182 = vector.load %arg3[%c0_64, %c0_65] : memref<136x128xf32, #tpu.memory_space<vmem>>, vector<136x128xf32>
    %183 = vector.extract_strided_slice %182 {offsets = [0, 0], sizes = [128, 128], strides = [1, 1]} : vector<136x128xf32> to vector<128x128xf32>
    %cst_66 = arith.constant dense<0.000000e+00> : vector<8x128xf32>
    %184 = tpu.matmul %181, %183, %cst_66 {dimension_numbers = #tpu.dot_dimension_numbers<[1], [0], [0], [1], [0, 0, 1, 1], [], []>} : vector<8x128xf32>, vector<128x128xf32>, vector<8x128xf32> -> vector<8x128xf32>
    %185 = vector.extract_strided_slice %182 {offsets = [128, 0], sizes = [1, 128], strides = [1, 1]} : vector<136x128xf32> to vector<1x128xf32>
    %186 = vector.broadcast %185 : vector<1x128xf32> to vector<8x128xf32>
    %187 = arith.addf %184, %186 : vector<8x128xf32>
    %c0_67 = arith.constant 0 : index
    %c0_68 = arith.constant 0 : index
    %188 = vector.load %arg4[%c0_67, %c0_68] : memref<8x128xf32, #tpu.memory_space<vmem>>, vector<8x128xf32>
    tpu.vector_store %arg4[%c0_67, %c0_68], %187 {strides = array<i32>} : memref<8x128xf32, #tpu.memory_space<vmem>>, vector<8x128xf32>,
    return
  }
}

</mosaic_0001>

<bundles_post_ra>
// kernel: tpu_custom_call.1
= control target key start
LH: loop header
LB: loop body
LE: loop exit
PB: predicated region body
PF: predicated region fallthrough
CT: control target
= control target key end

     0   :  { %9 = vsyncpa [#allocation4], 0  ;;  %s2545_s0 = inlined_call_operand.vmem [shape: f32[64,6], index: 0, kind: input, shape index: {}]   ;;  %s2546_s1 = inlined_call_operand.vmem [shape: f32[6,512], index: 1, kind: input, shape index: {}]   ;;  %s2547_s2 = inlined_call_operand.hbm [shape: f32[128,512], index: 2, kind: input, shape index: {}]   ;;  %s2548_s3 = inlined_call_operand.hbm [shape: f32[136,128], index: 3, kind: input, shape index: {}]   ;;  %s2549_s4 = inlined_call_operand.hbm [shape: f32[8,128], index: 4, kind: output, shape index: {}]  }
   0x1   :  { %10 = vsyncpa [#allocation7], 0 }
   0x2   :  { %11 = vsyncpa [#allocation5], 0  ;;  %s20_s17 = sshll.u32 %s2547_s2, 4  ;;  %s1534_s18 = smov [#allocation3]   ;;  %s21_s17 = int_to_ptr.hbm [resolvable:$true] %s20_s17 }
   0x3   :  { %s22_s19 = sshll.u32 %s1534_s18, 4  ;;  %s33_s22 = sshll.u32 %s2548_s3, 4  ;;  %s23_s19 = int_to_ptr.vmem [resolvable:$true] %s22_s19  ;;  %s34_s22 = int_to_ptr.hbm [resolvable:$true] %s33_s22 }
   0x4   :  { %s1535_s23 = smov 512   ;;  %s1536_s24 = smov 32  }
   0x5   :  { %28 = dma.hbm_to_vmem [thread:$0]  %s21_s17, 8192, %s23_s19, [#allocation4], %s1535_s23, %s1535_s23, %s1536_s24  }
   0x6   :  { %s1537_s25 = smov [#allocation6]   ;;  %s1538_s27 = smov 128  }
   0x7   :  { %s35_s26 = sshll.u32 %s1537_s25, 4  ;;  %s1539_s28 = smov 8   ;;  %s36_s26 = int_to_ptr.vmem [resolvable:$true] %s35_s26 }
   0x8   :  { %41 = dma.hbm_to_vmem [thread:$0]  %s34_s22, 2176, %s36_s26, [#allocation7], %s1538_s27, %s1538_s27, %s1539_s28  }
   0x9   :  { %1528 = dma.done.wait [#allocation4], 8192  }
   0xa   :  { %1529 = vsyncadd [#allocation4], 4294959104 }
   0xb   :  { %1530 = dma.done.wait [#allocation7], 2176  }
   0xc   :  { %1531 = vsyncadd [#allocation7], 4294965120  ;;  %vm87_vm0 = vcmask 1045504   ;;  %v58_v0 = vld [vmem:[%s2546_s1] sm:$0x3f]  ;;  %vm62_vm1 = vcmask 48128  }
   0xd   :  { %v50_v1 = vld [vmem:[%s2545_s0] sm:$0xff]  ;;  %v1582_v2 = vld [vmem:[%s2545_s0 + $0x28] sm:$0xff]  ;;  %1265 = vmatpush.msk.msra.mxu0 %vm87_vm0, %v58_v0  ;;  %1301 = vmatpush.msk.msra.mxu1 %vm87_vm0, %v58_v0  ;;  %v1589_v3 = vld [vmem:[%s2545_s0 + $0x30] sm:$0xff]  ;;  %s1254_s27 = sshll.u32 %s2549_s4, 4  ;;  %s1255_s27 = int_to_ptr.hbm [resolvable:$true] %s1254_s27 }
   0xe   :  { %v1594_v4 = vld [vmem:[%s2545_s0 + $0x38] sm:$0xff]  ;;  %1302 = vmatpush.msk.msra.mxu2 %vm87_vm0, %v58_v0  ;;  %1303 = vmatpush.msk.msra.mxu3 %vm87_vm0, %v58_v0  ;;  %v59_v5 = vld [vmem:[%s2546_s1 + $0x8] sm:$0x3f]  ;;  %v60_v7 = vld [vmem:[%s2546_s1 + $0x10] sm:$0x3f] }
   0xf   :  { %v61_v6 = vld [vmem:[%s2546_s1 + $0x18] sm:$0x3f]  ;;  %1266 = vmatmul.msk.f32.vlgmr.msra.gmra.mxu0 %vm62_vm1, %v50_v1  ;;  %1271 = vmatmul.msk.f32.vlgmr.msra.gmra.mxu1 %vm62_vm1, %v1582_v2  ;;  %v1610_v8 = vld [vmem:[#allocation3 + $0x1e8] sm:$0xff]  ;;  %v1618_v10 = vld [vmem:[#allocation3 + $0x1e0] sm:$0xff] }
  0x10   :  { %1272 = vmatmul.msk.f32.vlgmr.msra.gmra.mxu2 %vm62_vm1, %v1589_v3  ;;  %1273 = vmatmul.msk.f32.vlgmr.msra.gmra.mxu3 %vm62_vm1, %v1594_v4  ;;  %v1616_v9 = vld [vmem:[#allocation3 + $0x1f8] sm:$0xff]  ;;  %v1622_v11 = vld [vmem:[#allocation3 + $0x1c8] sm:$0xff]  ;;  %v1624_v12 = vld [vmem:[#allocation3 + $0x1f0] sm:$0xff] }
  0x11   :  { %1274 = vmatpush.msk.msrb.mxu1 %vm87_vm0, %v59_v5  ;;  %1292 = vmatpush.msk.msrb.mxu3 %vm87_vm0, %v61_v6  ;;  %v1628_v13 = vld [vmem:[#allocation3 + $0x1c0] sm:$0xff]  ;;  %v1630_v14 = vld [vmem:[#allocation3 + $0x1d8] sm:$0xff]  ;;  %v1634_v15 = vld [vmem:[#allocation3 + $0x1a8] sm:$0xff] }
  0x12   :  { %1283 = vmatpush.msk.msrb.mxu2 %vm87_vm0, %v60_v7  ;;  %364 = vmatpush.msrb.mxu0 %v1618_v10  ;;  %v1636_v16 = vld [vmem:[#allocation3 + $0x1d0] sm:$0xff]  ;;  %v51_v17 = vld [vmem:[%s2545_s0 + $0x8] sm:$0xff]  ;;  %v1645_v18 = vld [vmem:[#allocation3 + $0x1a0] sm:$0xff] }
  0x13   :  { %384 = vmatpush.msra.mxu1 %v1610_v8  ;;  %424 = vmatpush.msra.mxu3 %v1616_v9  ;;  %v1648_v19 = vld [vmem:[#allocation3 + $0x1b8] sm:$0xff]  ;;  %v1653_v20 = vld [vmem:[#allocation3 + $0x188] sm:$0xff]  ;;  %v1655_v21 = vld [vmem:[#allocation3 + $0x1b0] sm:$0xff] }
  0x14   :  { %404 = vmatpush.msra.mxu2 %v1624_v12  ;;  %365 = vmatpush.msrb.mxu0 %v1628_v13  ;;  %v1659_v22 = vld [vmem:[#allocation3 + $0x180] sm:$0xff]  ;;  %v1661_v23 = vld [vmem:[#allocation3 + $0x198] sm:$0xff]  ;;  %v1665_v24 = vld [vmem:[#allocation3 + $0x168] sm:$0xff] }
  0x15   :  { %385 = vmatpush.msra.mxu1 %v1622_v11  ;;  %425 = vmatpush.msra.mxu3 %v1630_v14  ;;  %v1667_v25 = vld [vmem:[#allocation3 + $0x190] sm:$0xff]  ;;  %v1669_v26 = vld [vmem:[#allocation3 + $0x160] sm:$0xff]  ;;  %v1673_v27 = vld [vmem:[#allocation3 + $0x178] sm:$0xff] }
  0x16   :  { %405 = vmatpush.msra.mxu2 %v1636_v16  ;;  %366 = vmatpush.msrb.mxu0 %v1645_v18  ;;  %v1677_v28 = vld [vmem:[#allocation3 + $0x148] sm:$0xff]  ;;  %v1679_v29 = vld [vmem:[#allocation3 + $0x170] sm:$0xff]  ;;  %v1688_v31 = vld [vmem:[#allocation3 + $0x140] sm:$0xff] }
  0x17   :  { %386 = vmatpush.msra.mxu1 %v1634_v15  ;;  %1267 = vmatmul.msk.f32.gmra.mxu0 %vm62_vm1, %v51_v17  ;;  %v52_v30 = vld [vmem:[%s2545_s0 + $0x10] sm:$0xff]  ;;  %v1691_v32 = vld [vmem:[#allocation3 + $0x158] sm:$0xff]  ;;  %v1696_v33 = vld [vmem:[#allocation3 + $0x128] sm:$0xff] }
  0x18   :  { %1275 = vmatmul.msk.f32.vlgmr.msrb.gmra.mxu1 %vm62_vm1, %v50_v1  ;;  %1284 = vmatmul.msk.f32.vlgmr.msrb.gmra.mxu2 %vm62_vm1, %v50_v1  ;;  %v1698_v34 = vld [vmem:[#allocation3 + $0x150] sm:$0xff]  ;;  %v1702_v35 = vld [vmem:[#allocation3 + $0x120] sm:$0xff]  ;;  %v1704_v36 = vld [vmem:[#allocation3 + $0x138] sm:$0xff] }
  0x19   :  { %1293 = vmatmul.msk.f32.vlgmr.msrb.gmra.mxu3 %vm62_vm1, %v50_v1  ;;  %387 = vmatpush.msra.mxu1 %v1653_v20  ;;  %v1708_v37 = vld [vmem:[#allocation3 + $0x108] sm:$0xff]  ;;  %v1710_v38 = vld [vmem:[#allocation3 + $0x130] sm:$0xff]  ;;  %v1712_v39 = vld [vmem:[#allocation3 + $0x100] sm:$0xff] }
  0x1a   :  { %426 = vmatpush.msra.mxu3 %v1648_v19  ;;  %406 = vmatpush.msra.mxu2 %v1655_v21  ;;  %v1716_v40 = vld [vmem:[#allocation3 + $0x118] sm:$0xff]  ;;  %v1720_v41 = vld [vmem:[#allocation3 + $0xe8] sm:$0xff]  ;;  %v1722_v42 = vld [vmem:[#allocation3 + $0x110] sm:$0xff] }
  0x1b   :  { %367 = vmatpush.msrb.mxu0 %v1659_v22  ;;  %388 = vmatpush.msra.mxu1 %v1665_v24  ;;  %v53_v43 = vld [vmem:[%s2545_s0 + $0x18] sm:$0xff]  ;;  %v1731_v44 = vld [vmem:[#allocation3 + $0xe0] sm:$0xff]  ;;  %v1739_v46 = vld [vmem:[#allocation3 + $0xc8] sm:$0xff] }
  0x1c   :  { %427 = vmatpush.msra.mxu3 %v1661_v23  ;;  %407 = vmatpush.msra.mxu2 %v1667_v25  ;;  %v1734_v45 = vld [vmem:[#allocation3 + $0xf8] sm:$0xff]  ;;  %v1741_v47 = vld [vmem:[#allocation3 + $0xf0] sm:$0xff]  ;;  %v1745_v48 = vld [vmem:[#allocation3 + $0xc0] sm:$0xff] }
  0x1d   :  { %368 = vmatpush.msrb.mxu0 %v1669_v26  ;;  %389 = vmatpush.msra.mxu1 %v1677_v28  ;;  %v1747_v49 = vld [vmem:[#allocation3 + $0xd8] sm:$0xff]  ;;  %v1751_v50 = vld [vmem:[#allocation3 + $0xa8] sm:$0xff]  ;;  %v1753_v51 = vld [vmem:[#allocation3 + $0xd0] sm:$0xff] }
  0x1e   :  { %428 = vmatpush.msra.mxu3 %v1673_v27  ;;  %408 = vmatpush.msra.mxu2 %v1679_v29  ;;  %v1755_v52 = vld [vmem:[#allocation3 + $0xa0] sm:$0xff]  ;;  %v1759_v53 = vld [vmem:[#allocation3 + $0xb8] sm:$0xff]  ;;  %v1763_v54 = vld [vmem:[#allocation3 + $0x88] sm:$0xff] }
  0x1f   :  { %1268 = vmatmul.msk.f32.gmra.mxu0 %vm62_vm1, %v52_v30  ;;  %390 = vmatpush.msra.mxu1 %v1696_v33  ;;  %2619 = vst [vmem:[#allocation12_spill] sm:$0xff] %v1759_v53  ;;  %v1765_v55 = vld [vmem:[#allocation3 + $0xb0] sm:$0xff]  ;;  %v1767_v56 = vld [vmem:[#allocation3 + $0x80] sm:$0xff]  ;;  %v1782_v59 = vld [vmem:[#allocation3 + $0x98] sm:$0xff] }
  0x20   :  { %1276 = vmatmul.msk.f32.gmra.mxu1 %vm62_vm1, %v51_v17  ;;  %1285 = vmatmul.msk.f32.gmra.mxu2 %vm62_vm1, %v51_v17  ;;  %2620 = vst [vmem:[#allocation13_spill] sm:$0xff] %v1763_v54  ;;  %v54_v57 = vld [vmem:[%s2545_s0 + $0x20] sm:$0xff]  ;;  %v1784_v60 = vld [vmem:[#allocation3 + $0x68] sm:$0xff]  ;;  %v1790_v62 = vld [vmem:[#allocation3 + $0x90] sm:$0xff]  ;;  %s1541_s0 = smov [#allocation8]  }
  0x21   :  { %1294 = vmatmul.msk.f32.gmra.mxu3 %vm62_vm1, %v51_v17  ;;  %369 = vmatpush.msrb.mxu0 %v1688_v31  ;;  %2621 = vst [vmem:[#allocation14_spill] sm:$0xff] %v1767_v56  ;;  %v1776_v58 = vld [vmem:[#allocation3 + $0x60] sm:$0xff]  ;;  %v1794_v63 = vld [vmem:[#allocation3 + $0x78] sm:$0xff]  ;;  %v1796_v0 = vld [vmem:[#allocation3 + $0x48] sm:$0xff]  ;;  %s1252_s24 = sshll.u32 %s1541_s0, 4  ;;  %s1253_s24 = int_to_ptr.vmem [resolvable:$true] %s1252_s24 }
  0x22   :  { %429 = vmatpush.msra.mxu3 %v1691_v32  ;;  %409 = vmatpush.msra.mxu2 %v1698_v34  ;;  %2622 = vst [vmem:[#allocation15_spill] sm:$0xff] %v1776_v58  ;;  %v1788_v61 = vld [vmem:[#allocation3 + $0x40] sm:$0xff]  ;;  %v1802_v5 = vld [vmem:[#allocation3 + $0x70] sm:$0xff]  ;;  %v1806_v6 = vld [vmem:[#allocation3 + $0x58] sm:$0xff] }
  0x23   :  { %370 = vmatpush.msrb.mxu0 %v1702_v35  ;;  %391 = vmatpush.msra.mxu1 %v1708_v37  ;;  %2623 = vst [vmem:[#allocation16_spill] sm:$0xff] %v1782_v59  ;;  %v1798_v1 = vld [vmem:[#allocation3 + $0x20] sm:$0xff]  ;;  %v1808_v7 = vld [vmem:[#allocation3 + $0x28] sm:$0xff] }
  0x24   :  { %430 = vmatpush.msra.mxu3 %v1704_v36  ;;  %410 = vmatpush.msra.mxu2 %v1710_v38  ;;  %2624 = vst [vmem:[#allocation17_spill] sm:$0xff] %v1784_v60  ;;  %v1810_v17 = vld [vmem:[#allocation3] sm:$0xff] }
  0x25   :  { %371 = vmatpush.msrb.mxu0 %v1712_v39  ;;  %392 = vmatpush.msra.mxu1 %v1720_v41  ;;  %2625 = vst [vmem:[#allocation18_spill] sm:$0xff] %v1788_v61 }
  0x26   :  { %431 = vmatpush.msra.mxu3 %v1716_v40  ;;  %411 = vmatpush.msra.mxu2 %v1722_v42  ;;  %2626 = vst [vmem:[#allocation19_spill] sm:$0xff] %v1790_v62 }
  0x27   :  { %1269 = vmatmul.msk.f32.gmra.mxu0 %vm62_vm1, %v53_v43  ;;  %393 = vmatpush.msra.mxu1 %v1739_v46  ;;  %2627 = vst [vmem:[#allocation20_spill] sm:$0xff] %v1794_v63 }
  0x28   :  { %1277 = vmatmul.msk.f32.gmra.mxu1 %vm62_vm1, %v52_v30  ;;  %1286 = vmatmul.msk.f32.gmra.mxu2 %vm62_vm1, %v52_v30  ;;  %2628 = vst [vmem:[#allocation21_spill] sm:$0xff] %v1796_v0 }
  0x29   :  { %1295 = vmatmul.msk.f32.gmra.mxu3 %vm62_vm1, %v52_v30  ;;  %372 = vmatpush.msrb.mxu0 %v1731_v44  ;;  %2629 = vst [vmem:[#allocation22_spill] sm:$0xff] %v1798_v1  ;;  %v1818_v30 = vld [vmem:[#allocation3 + $0x50] sm:$0xff] }
  0x2a   :  { %432 = vmatpush.msra.mxu3 %v1734_v45  ;;  %412 = vmatpush.msra.mxu2 %v1741_v47  ;;  %2630 = vst [vmem:[#allocation23_spill] sm:$0xff] %v1802_v5 }
  0x2b   :  { %373 = vmatpush.msrb.mxu0 %v1745_v48  ;;  %394 = vmatpush.msra.mxu1 %v1751_v50  ;;  %2631 = vst [vmem:[#allocation24_spill] sm:$0xff] %v1806_v6 }
  0x2c   :  { %433 = vmatpush.msra.mxu3 %v1747_v49  ;;  %413 = vmatpush.msra.mxu2 %v1753_v51  ;;  %2632 = vst [vmem:[#allocation25_spill] sm:$0xff] %v1808_v7 }
  0x2d   :  { %374 = vmatpush.msrb.mxu0 %v1755_v52  ;;  %395 = vmatpush.msra.mxu1 %v1763_v54  ;;  %2633 = vst [vmem:[#allocation26_spill] sm:$0xff] %v1810_v17 }
  0x2e   :  { %434 = vmatpush.msra.mxu3 %v1759_v53  ;;  %414 = vmatpush.msra.mxu2 %v1765_v55  ;;  %2634 = vst [vmem:[#allocation27_spill] sm:$0xff] %v1818_v30 }
  0x2f   :  { %375 = vmatpush.msrb.mxu0 %v1767_v56  ;;  %396 = vmatpush.msra.mxu1 %v1784_v60 }
  0x30   :  { %1278 = vmatmul.msk.f32.gmra.mxu1 %vm62_vm1, %v53_v43  ;;  %1270 = vmatmul.msk.f32.gmra.mxu0 %vm62_vm1, %v54_v57 }
  0x31   :  { %1287 = vmatmul.msk.f32.gmra.mxu2 %vm62_vm1, %v53_v43  ;;  %1296 = vmatmul.msk.f32.gmra.mxu3 %vm62_vm1, %v53_v43  ;;  %v1822_v43 = vld [vmem:[#allocation3 + $0x38] sm:$0xff] }
  0x32   :  { %376 = vmatpush.msrb.mxu0 %v1776_v58  ;;  %435 = vmatpush.msra.mxu3 %v1782_v59  ;;  %2635 = vst [vmem:[#allocation28_spill] sm:$0xff] %v1822_v43 }
  0x33   :  { %415 = vmatpush.msra.mxu2 %v1790_v62  ;;  %397 = vmatpush.msra.mxu1 %v1796_v0  ;;  %v1540_v0 = vmov 0.0  }
  0x34   :  { %377 = vmatpush.msrb.mxu0 %v1788_v61  ;;  %436 = vmatpush.msra.mxu3 %v1794_v63  ;;  %v1824_v61 = vld [vmem:[#allocation3 + $0x8] sm:$0xff] }
  0x35   :  { %416 = vmatpush.msra.mxu2 %v1802_v5  ;;  %398 = vmatpush.msra.mxu1 %v1808_v7  ;;  %2636 = vst [vmem:[#allocation29_spill] sm:$0xff] %v1824_v61  ;;  %v1832_v7 = vld [vmem:[#allocation3 + $0x18] sm:$0xff] }
  0x36   :  { %378 = vmatpush.msrb.mxu0 %v1798_v1  ;;  %437 = vmatpush.msra.mxu3 %v1806_v6  ;;  %v1828_v1 = vld [vmem:[#allocation3 + $0x30] sm:$0xff]  ;;  %2638 = vst [vmem:[#allocation31_spill] sm:$0xff] %v1832_v7 }
  0x37   :  { %2637 = vst [vmem:[#allocation30_spill] sm:$0xff] %v1828_v1  ;;  %417 = vmatpush.msra.mxu2 %v1818_v30  ;;  %399 = vmatpush.msra.mxu1 %v1824_v61 }
  0x38   :  { %379 = vmatpush.msrb.mxu0 %v1810_v17  ;;  %1279 = vmatmul.msk.f32.gmra.mxu1 %vm62_vm1, %v54_v57  ;;  %v1836_v17 = vld [vmem:[#allocation3 + $0x10] sm:$0xff] }
  0x39   :  { %1288 = vmatmul.msk.f32.gmra.mxu2 %vm62_vm1, %v54_v57  ;;  %380 = vmatmul.f32.vlgmr.msrb.gmra.mxu0 %v1540_v0  ;;  %2639 = vst [vmem:[#allocation32_spill] sm:$0xff] %v1836_v17 }
  0x3a   :  { %1297 = vmatmul.msk.f32.gmra.mxu3 %vm62_vm1, %v54_v57  ;;  %418 = vmatpush.msra.mxu2 %v1828_v1  ;;  %v2643_v57 = vld [vmem:[#allocation25_spill] sm:$0xff] }
  0x3b   :  { %438 = vmatpush.msra.mxu3 %v1822_v43  ;;  %470 = vmatpush.msra.mxu0 %v1618_v10 }
  0x3c   :  { %490 = vmatpush.msrb.mxu1 %v1610_v8  ;;  %419 = vmatpush.msra.mxu2 %v1836_v17 }
  0x3d   :  { %439 = vmatpush.msra.mxu3 %v1832_v7  ;;  %471 = vmatpush.msra.mxu0 %v1628_v13 }
  0x3e   :  { %510 = vmatpush.msrb.mxu2 %v1624_v12  ;;  %491 = vmatpush.msrb.mxu1 %v1622_v11 }
  0x3f   :  { %530 = vmatpush.msrb.mxu3 %v1616_v9  ;;  %472 = vmatpush.msra.mxu0 %v1645_v18 }
  0x40   :  { %1280 = vmatmul.msk.f32.gmra.mxu1 %vm62_vm1, %v1582_v2  ;;  %511 = vmatpush.msrb.mxu2 %v1636_v16 }
  0x41   :  { %531 = vmatpush.msrb.mxu3 %v1630_v14  ;;  %1289 = vmatmul.msk.f32.gmra.mxu2 %vm62_vm1, %v1582_v2 }
  0x42   :  { %1298 = vmatmul.msk.f32.gmra.mxu3 %vm62_vm1, %v1582_v2  ;;  %492 = vmatpush.msrb.mxu1 %v1634_v15  ;;  %v2640_v2 = vld [vmem:[#allocation18_spill] sm:$0xff] }
  0x43   :  { %512 = vmatpush.msrb.mxu2 %v1655_v21  ;;  %532 = vmatpush.msrb.mxu3 %v1648_v19 }
  0x44   :  { %473 = vmatpush.msra.mxu0 %v1659_v22  ;;  %493 = vmatpush.msrb.mxu1 %v1653_v20 }
  0x45   :  { %513 = vmatpush.msrb.mxu2 %v1667_v25  ;;  %533 = vmatpush.msrb.mxu3 %v1661_v23 }
  0x46   :  { %474 = vmatpush.msra.mxu0 %v1669_v26  ;;  %494 = vmatpush.msrb.mxu1 %v1665_v24 }
  0x47   :  { %514 = vmatpush.msrb.mxu2 %v1679_v29  ;;  %534 = vmatpush.msrb.mxu3 %v1673_v27 }
  0x48   :  { %1281 = vmatmul.msk.f32.gmra.mxu1 %vm62_vm1, %v1589_v3  ;;  %475 = vmatpush.msra.mxu0 %v1688_v31 }
  0x49   :  { %1290 = vmatmul.msk.f32.gmra.mxu2 %vm62_vm1, %v1589_v3  ;;  %495 = vmatpush.msrb.mxu1 %v1677_v28 }
  0x4a   :  { %1299 = vmatmul.msk.f32.gmra.mxu3 %vm62_vm1, %v1589_v3  ;;  %515 = vmatpush.msrb.mxu2 %v1698_v34  ;;  %v2641_v3 = vld [vmem:[#allocation21_spill] sm:$0xff] }
  0x4b   :  { %535 = vmatpush.msrb.mxu3 %v1691_v32  ;;  %476 = vmatpush.msra.mxu0 %v1702_v35 }
  0x4c   :  { %496 = vmatpush.msrb.mxu1 %v1696_v33  ;;  %516 = vmatpush.msrb.mxu2 %v1710_v38 }
  0x4d   :  { %536 = vmatpush.msrb.mxu3 %v1704_v36  ;;  %477 = vmatpush.msra.mxu0 %v1712_v39 }
  0x4e   :  { %497 = vmatpush.msrb.mxu1 %v1708_v37  ;;  %517 = vmatpush.msrb.mxu2 %v1722_v42 }
  0x4f   :  { %537 = vmatpush.msrb.mxu3 %v1716_v40  ;;  %478 = vmatpush.msra.mxu0 %v1731_v44 }
  0x50   :  { %1282 = vmatmul.msk.f32.gmra.mxu1 %vm62_vm1, %v1594_v4  ;;  %518 = vmatpush.msrb.mxu2 %v1741_v47 }
  0x51   :  { %1291 = vmatmul.msk.f32.gmra.mxu2 %vm62_vm1, %v1594_v4  ;;  %498 = vmatpush.msrb.mxu1 %v1720_v41 }
  0x52   :  { %1300 = vmatmul.msk.f32.gmra.mxu3 %vm62_vm1, %v1594_v4  ;;  %479 = vmatpush.msra.mxu0 %v1745_v48  ;;  %v2642_v4 = vld [vmem:[#allocation22_spill] sm:$0xff] }
  0x53   :  { %538 = vmatpush.msrb.mxu3 %v1734_v45  ;;  %499 = vmatpush.msrb.mxu1 %v1739_v46 }
  0x54   :  { %519 = vmatpush.msrb.mxu2 %v1753_v51  ;;  %480 = vmatpush.msra.mxu0 %v1755_v52 }
  0x55   :  { %539 = vmatpush.msrb.mxu3 %v1747_v49  ;;  %500 = vmatpush.msrb.mxu1 %v1751_v50 }
  0x56   :  { %520 = vmatpush.msrb.mxu2 %v1765_v55  ;;  %481 = vmatpush.msra.mxu0 %v1767_v56 }
  0x57   :  { %540 = vmatpush.msrb.mxu3 %v1759_v53  ;;  %501 = vmatpush.msrb.mxu1 %v1763_v54 }
  0x58   :  { %400 = vmatmul.f32.vlgmr.msra.gmra.mxu1 %v1540_v0  ;;  %521 = vmatpush.msrb.mxu2 %v1790_v62 }
  0x59   :  { %420 = vmatmul.f32.vlgmr.msra.gmra.mxu2 %v1540_v0  ;;  %541 = vmatpush.msrb.mxu3 %v1782_v59 }
  0x5a   :  { %440 = vmatmul.f32.vlgmr.msra.gmra.mxu3 %v1540_v0  ;;  %482 = vmatpush.msra.mxu0 %v1776_v58  ;;  %v2644_v0 = vld [vmem:[#allocation26_spill] sm:$0xff] }
  0x5b   :  { %502 = vmatpush.msrb.mxu1 %v1784_v60  ;;  %522 = vmatpush.msrb.mxu2 %v1802_v5 }
  0x5c   :  { %542 = vmatpush.msrb.mxu3 %v1794_v63  ;;  %483 = vmatpush.msra.mxu0 %v2640_v2 }
  0x5d   :  { %503 = vmatpush.msrb.mxu1 %v2641_v3  ;;  %523 = vmatpush.msrb.mxu2 %v1818_v30 }
  0x5e   :  { %543 = vmatpush.msrb.mxu3 %v1806_v6  ;;  %484 = vmatpush.msra.mxu0 %v2642_v4 }
  0x5f   :  { %504 = vmatpush.msrb.mxu1 %v2643_v57  ;;  %524 = vmatpush.msrb.mxu2 %v1828_v1 }
  0x60   :  { %544 = vmatpush.msrb.mxu3 %v1822_v43  ;;  %485 = vmatpush.msra.mxu0 %v2644_v0 }
  0x61   :  { %505 = vmatpush.msrb.mxu1 %v1824_v61  ;;  %525 = vmatpush.msrb.mxu2 %v1836_v17 }
  0x62   :  { %545 = vmatpush.msrb.mxu3 %v1832_v7  ;;  %576 = vmatpush.msrb.mxu0 %v1618_v10 }
  0x63   :  { %596 = vmatpush.msra.mxu1 %v1610_v8  ;;  %616 = vmatpush.msra.mxu2 %v1624_v12 }
  0x64   :  { %636 = vmatpush.msra.mxu3 %v1616_v9  ;;  %577 = vmatpush.msrb.mxu0 %v1628_v13 }
  0x65   :  { %597 = vmatpush.msra.mxu1 %v1622_v11  ;;  %617 = vmatpush.msra.mxu2 %v1636_v16 }
  0x66   :  { %637 = vmatpush.msra.mxu3 %v1630_v14  ;;  %578 = vmatpush.msrb.mxu0 %v1645_v18 }
  0x67   :  { %598 = vmatpush.msra.mxu1 %v1634_v15  ;;  %618 = vmatpush.msra.mxu2 %v1655_v21 }
  0x68   :  { %638 = vmatpush.msra.mxu3 %v1648_v19  ;;  %579 = vmatpush.msrb.mxu0 %v1659_v22 }
  0x69   :  { %599 = vmatpush.msra.mxu1 %v1653_v20  ;;  %619 = vmatpush.msra.mxu2 %v1667_v25 }
  0x6a   :  { %639 = vmatpush.msra.mxu3 %v1661_v23  ;;  %580 = vmatpush.msrb.mxu0 %v1669_v26 }
  0x6b   :  { %600 = vmatpush.msra.mxu1 %v1665_v24  ;;  %620 = vmatpush.msra.mxu2 %v1679_v29 }
  0x6c   :  { %640 = vmatpush.msra.mxu3 %v1673_v27  ;;  %581 = vmatpush.msrb.mxu0 %v1688_v31 }
  0x6d   :  { %601 = vmatpush.msra.mxu1 %v1677_v28  ;;  %621 = vmatpush.msra.mxu2 %v1698_v34 }
  0x6e   :  { %641 = vmatpush.msra.mxu3 %v1691_v32  ;;  %582 = vmatpush.msrb.mxu0 %v1702_v35 }
  0x6f   :  { %602 = vmatpush.msra.mxu1 %v1696_v33  ;;  %622 = vmatpush.msra.mxu2 %v1710_v38 }
  0x70   :  { %642 = vmatpush.msra.mxu3 %v1704_v36  ;;  %583 = vmatpush.msrb.mxu0 %v1712_v39 }
  0x71   :  { %603 = vmatpush.msra.mxu1 %v1708_v37  ;;  %623 = vmatpush.msra.mxu2 %v1722_v42 }
  0x72   :  { %643 = vmatpush.msra.mxu3 %v1716_v40  ;;  %584 = vmatpush.msrb.mxu0 %v1731_v44 }
  0x73   :  { %604 = vmatpush.msra.mxu1 %v1720_v41  ;;  %624 = vmatpush.msra.mxu2 %v1741_v47 }
  0x74   :  { %644 = vmatpush.msra.mxu3 %v1734_v45  ;;  %585 = vmatpush.msrb.mxu0 %v1745_v48 }
  0x75   :  { %605 = vmatpush.msra.mxu1 %v1739_v46  ;;  %625 = vmatpush.msra.mxu2 %v1753_v51 }
  0x76   :  { %645 = vmatpush.msra.mxu3 %v1747_v49  ;;  %586 = vmatpush.msrb.mxu0 %v1755_v52 }
  0x77   :  { %606 = vmatpush.msra.mxu1 %v1751_v50  ;;  %626 = vmatpush.msra.mxu2 %v1765_v55 }
  0x78   :  { %646 = vmatpush.msra.mxu3 %v1759_v53  ;;  %587 = vmatpush.msrb.mxu0 %v1767_v56 }
  0x79   :  { %607 = vmatpush.msra.mxu1 %v1763_v54  ;;  %627 = vmatpush.msra.mxu2 %v1790_v62 }
  0x7a   :  { %647 = vmatpush.msra.mxu3 %v1782_v59  ;;  %588 = vmatpush.msrb.mxu0 %v1776_v58 }
  0x7b   :  { %608 = vmatpush.msra.mxu1 %v1784_v60  ;;  %628 = vmatpush.msra.mxu2 %v1802_v5 }
  0x7c   :  { %648 = vmatpush.msra.mxu3 %v1794_v63  ;;  %589 = vmatpush.msrb.mxu0 %v2640_v2 }
  0x7d   :  { %609 = vmatpush.msra.mxu1 %v2641_v3  ;;  %629 = vmatpush.msra.mxu2 %v1818_v30 }
  0x7e   :  { %649 = vmatpush.msra.mxu3 %v1806_v6  ;;  %590 = vmatpush.msrb.mxu0 %v2642_v4 }
  0x7f   :  { %610 = vmatpush.msra.mxu1 %v2643_v57  ;;  %630 = vmatpush.msra.mxu2 %v1828_v1 }
  0x80   :  { %650 = vmatpush.msra.mxu3 %v1822_v43  ;;  %591 = vmatpush.msrb.mxu0 %v2644_v0 }
  0x81   :  { %611 = vmatpush.msra.mxu1 %v1824_v61  ;;  %631 = vmatpush.msra.mxu2 %v1836_v17 }
  0x82   :  { %651 = vmatpush.msra.mxu3 %v1832_v7 }
  0x8c   :  { %v1990_v3 = vpop.f32.mrf.mxu1  ;;  %v117_v57 = vpop.f32.mrf.mxu0 }
  0x8d   :  { %2645 = vst [vmem:[#allocation33_spill] sm:$0xff] %v1990_v3 }
  0x93   :  { %v1992_v30 = vpop.f32.mrf.mxu2  ;;  %v1994_v6 = vpop.f32.mrf.mxu3 }
  0x94   :  { %2646 = vst [vmem:[#allocation34_spill] sm:$0xff] %v1992_v30  ;;  %v1998_v43 = vpop.f32.mrf.mxu0 }
  0x95   :  { %2647 = vst [vmem:[#allocation35_spill] sm:$0xff] %v1994_v6  ;;  %v158_v4 = vpop.f32.mrf.mxu1 }
  0x96   :  { %2649 = vst [vmem:[#allocation37_spill] sm:$0xff] %v1998_v43 }
  0x9b   :  { %v199_v2 = vpop.f32.mrf.mxu2 }
  0x9c   :  { %v240_v1 = vpop.f32.mrf.mxu3  ;;  %v2012_v6 = vpop.f32.mrf.mxu0 }
  0x9d   :  { %v1996_v63 = vpop.f32.mrf.mxu1  ;;  %2656 = vst [vmem:[#allocation44_spill] sm:$0xff] %v2012_v6 }
  0x9e   :  { %2648 = vst [vmem:[#allocation36_spill] sm:$0xff] %v1996_v63 }
  0xa3   :  { %v2000_v0 = vpop.f32.mrf.mxu2 }
  0xa4   :  { %2650 = vst [vmem:[#allocation38_spill] sm:$0xff] %v2000_v0  ;;  %v2002_v61 = vpop.f32.mrf.mxu3  ;;  %v2020_v43 = vpop.f32.mrf.mxu0 }
  0xa5   :  { %2651 = vst [vmem:[#allocation39_spill] sm:$0xff] %v2002_v61  ;;  %v2004_v17 = vpop.f32.mrf.mxu1 }
  0xa6   :  { %2652 = vst [vmem:[#allocation40_spill] sm:$0xff] %v2004_v17 }
  0xa7   :  { %2660 = vst [vmem:[#allocation48_spill] sm:$0xff] %v2020_v43 }
  0xab   :  { %v2006_v7 = vpop.f32.mrf.mxu2 }
  0xac   :  { %2653 = vst [vmem:[#allocation41_spill] sm:$0xff] %v2006_v7  ;;  %v2008_v3 = vpop.f32.mrf.mxu3 }
  0xad   :  { %2654 = vst [vmem:[#allocation42_spill] sm:$0xff] %v2008_v3  ;;  %v2010_v30 = vpop.f32.mrf.mxu1  ;;  %v2028_v7 = vpop.f32.mrf.mxu0 }
  0xae   :  { %2655 = vst [vmem:[#allocation43_spill] sm:$0xff] %v2010_v30 }
  0xaf   :  { %2664 = vst [vmem:[#allocation52_spill] sm:$0xff] %v2028_v7 }
  0xb4   :  { %v2014_v5 = vpop.f32.mrf.mxu2  ;;  %v2016_v60 = vpop.f32.mrf.mxu3 }
  0xb5   :  { %2657 = vst [vmem:[#allocation45_spill] sm:$0xff] %v2014_v5  ;;  %v2018_v63 = vpop.f32.mrf.mxu1 }
  0xb6   :  { %2658 = vst [vmem:[#allocation46_spill] sm:$0xff] %v2016_v60  ;;  %v381_v5 = vpop.f32.mrf.mxu0 }
  0xb7   :  { %2659 = vst [vmem:[#allocation47_spill] sm:$0xff] %v2018_v63 }
  0xbc   :  { %v2022_v0 = vpop.f32.mrf.mxu2 }
  0xbd   :  { %2661 = vst [vmem:[#allocation49_spill] sm:$0xff] %v2022_v0  ;;  %v2024_v61 = vpop.f32.mrf.mxu3  ;;  %v2026_v17 = vpop.f32.mrf.mxu1  ;;  %v444_v0 = vadd.f32 %v381_v5, %v117_v57 }
  0xbe   :  { %2662 = vst [vmem:[#allocation50_spill] sm:$0xff] %v2024_v61 }
  0xbf   :  { %2663 = vst [vmem:[#allocation51_spill] sm:$0xff] %v2026_v17  ;;  %v448_v58 = vmul.f32 0.5, %v444_v0 }
  0xc1   :  { %1312 = vtanh.f32 %v448_v58 }
  0xc4   :  { %v2030_v3 = vpop.f32.mrf.mxu2 }
  0xc5   :  { %2665 = vst [vmem:[#allocation53_spill] sm:$0xff] %v2030_v3  ;;  %v2032_v30 = vpop.f32.mrf.mxu3  ;;  %v2034_v6 = vpop.f32.mrf.mxu1 }
  0xc6   :  { %2666 = vst [vmem:[#allocation54_spill] sm:$0xff] %v2032_v30 }
  0xc7   :  { %2667 = vst [vmem:[#allocation55_spill] sm:$0xff] %v2034_v6  ;;  %v1313_v54 = vpop.eup %1312 }
  0xcc   :  { %v2036_v60 = vpop.f32.mrf.mxu2 }
  0xcd   :  { %2668 = vst [vmem:[#allocation56_spill] sm:$0xff] %v2036_v60  ;;  %v2038_v63 = vpop.f32.mrf.mxu3  ;;  %v2040_v43 = vpop.f32.mrf.mxu1 }
  0xce   :  { %2669 = vst [vmem:[#allocation57_spill] sm:$0xff] %v2038_v63 }
  0xcf   :  { %2670 = vst [vmem:[#allocation58_spill] sm:$0xff] %v2040_v43  ;;  %v454_v43 = vmul.f32 0.5, %v1313_v54  ;;  %v2674_v54 = vld [vmem:[#allocation14_spill] sm:$0xff] }
  0xd1   :  { %v457_v0 = vadd.f32 0.5, %v454_v43  ;;  %v2682_v43 = vld [vmem:[#allocation18_spill] sm:$0xff] }
  0xd4   :  { %v2042_v61 = vpop.f32.mrf.mxu2 }
  0xd5   :  { %2671 = vst [vmem:[#allocation59_spill] sm:$0xff] %v2042_v61  ;;  %v2044_v17 = vpop.f32.mrf.mxu3  ;;  %v401_v7 = vpop.f32.mrf.mxu1 }
  0xd6   :  { %2672 = vst [vmem:[#allocation60_spill] sm:$0xff] %v2044_v17  ;;  %v445_v59 = vadd.f32 %v401_v7, %v158_v4  ;;  %v2684_v4 = vld [vmem:[#allocation27_spill] sm:$0xff] }
  0xd8   :  { %v449_v3 = vmul.f32 0.5, %v445_v59 }
  0xda   :  { %1314 = vtanh.f32 %v449_v3  ;;  %v2683_v3 = vld [vmem:[#allocation21_spill] sm:$0xff] }
  0xdc   :  { %v421_v30 = vpop.f32.mrf.mxu2 }
  0xdd   :  { %v446_v6 = vadd.f32 %v421_v30, %v199_v2  ;;  %v441_v62 = vpop.f32.mrf.mxu3 }
  0xde   :  { %v447_v60 = vadd.f32 %v441_v62, %v240_v1  ;;  %v2679_v1 = vld [vmem:[#allocation17_spill] sm:$0xff] }
  0xdf   :  { %v450_v56 = vmul.f32 0.5, %v446_v6  ;;  %v2680_v6 = vld [vmem:[#allocation23_spill] sm:$0xff] }
  0xe0   :  { %v1315_v63 = vpop.eup %1314  ;;  %1316 = vtanh.f32 %v447_v60  ;;  %v2676_v60 = vld [vmem:[#allocation19_spill] sm:$0xff] }
  0xe1   :  { %v455_v5 = vmul.f32 0.5, %v1315_v63  ;;  %1318 = vtanh.f32 %v450_v56  ;;  %v2675_v56 = vld [vmem:[#allocation13_spill] sm:$0xff]  ;;  %v2678_v63 = vld [vmem:[#allocation15_spill] sm:$0xff] }
  0xe3   :  { %v458_v57 = vadd.f32 0.5, %v455_v5  ;;  %v2685_v5 = vld [vmem:[#allocation24_spill] sm:$0xff] }
  0xe5   :  { %v461_v61 = vmul.f32 0.0, %v458_v57  ;;  %v2686_v57 = vld [vmem:[#allocation22_spill] sm:$0xff] }
  0xe6   :  { %v1317_v17 = vpop.eup %1316 }
  0xe7   :  { %v462_v53 = vmul.f32 %v1317_v17, %v457_v0  ;;  %v1319_v7 = vpop.eup %1318  ;;  %v2681_v17 = vld [vmem:[#allocation20_spill] sm:$0xff]  ;;  %v2687_v0 = vld [vmem:[#allocation25_spill] sm:$0xff] }
  0xe8   :  { %v456_v59 = vmul.f32 0.5, %v1319_v7  ;;  %v2688_v7 = vld [vmem:[#allocation30_spill] sm:$0xff] }
  0xe9   :  { %v2046_v58 = vadd.f32 %v462_v53, %v461_v61  ;;  %v2673_v53 = vld [vmem:[#allocation12_spill] sm:$0xff] }
  0xea   :  { %v459_v30 = vadd.f32 0.5, %v456_v59  ;;  %v2677_v61 = vld [vmem:[#allocation16_spill] sm:$0xff] }
  0xeb   :  { %1320 = vtanh.f32 %v2046_v58  ;;  %v2689_v59 = vld [vmem:[#allocation28_spill] sm:$0xff] }
  0xf1   :  { %v1321_v2 = vpop.eup %1320 }
  0xf2   :  { %v465_v62 = vmul.f32 %v1321_v2, %v459_v30  ;;  %v2690_v30 = vld [vmem:[#allocation26_spill] sm:$0xff]  ;;  %v2691_v2 = vld [vmem:[#allocation29_spill] sm:$0xff] }
  0xf4   :  { %486 = vmatmul.f32.vlgmr.msra.gmra.mxu0 %v465_v62  ;;  %506 = vmatmul.f32.vlgmr.msrb.gmra.mxu1 %v465_v62 }
  0xf5   :  { %526 = vmatmul.f32.vlgmr.msrb.gmra.mxu2 %v465_v62  ;;  %546 = vmatmul.f32.vlgmr.msrb.gmra.mxu3 %v465_v62  ;;  %v2692_v62 = vld [vmem:[#allocation32_spill] sm:$0xff] }
  0xf6   :  { %682 = vmatpush.msra.mxu0 %v1618_v10  ;;  %702 = vmatpush.msrb.mxu1 %v1610_v8 }
  0xf7   :  { %722 = vmatpush.msrb.mxu2 %v1624_v12  ;;  %742 = vmatpush.msrb.mxu3 %v1616_v9 }
  0xf8   :  { %683 = vmatpush.msra.mxu0 %v1628_v13  ;;  %703 = vmatpush.msrb.mxu1 %v1622_v11 }
  0xf9   :  { %723 = vmatpush.msrb.mxu2 %v1636_v16  ;;  %743 = vmatpush.msrb.mxu3 %v1630_v14 }
  0xfa   :  { %684 = vmatpush.msra.mxu0 %v1645_v18  ;;  %704 = vmatpush.msrb.mxu1 %v1634_v15 }
  0xfb   :  { %724 = vmatpush.msrb.mxu2 %v1655_v21  ;;  %744 = vmatpush.msrb.mxu3 %v1648_v19 }
  0xfc   :  { %685 = vmatpush.msra.mxu0 %v1659_v22  ;;  %705 = vmatpush.msrb.mxu1 %v1653_v20 }
  0xfd   :  { %725 = vmatpush.msrb.mxu2 %v1667_v25  ;;  %745 = vmatpush.msrb.mxu3 %v1661_v23 }
  0xfe   :  { %686 = vmatpush.msra.mxu0 %v1669_v26  ;;  %706 = vmatpush.msrb.mxu1 %v1665_v24 }
  0xff   :  { %726 = vmatpush.msrb.mxu2 %v1679_v29  ;;  %746 = vmatpush.msrb.mxu3 %v1673_v27 }
 0x100   :  { %687 = vmatpush.msra.mxu0 %v1688_v31  ;;  %707 = vmatpush.msrb.mxu1 %v1677_v28 }
 0x101   :  { %727 = vmatpush.msrb.mxu2 %v1698_v34  ;;  %747 = vmatpush.msrb.mxu3 %v1691_v32 }
 0x102   :  { %688 = vmatpush.msra.mxu0 %v1702_v35  ;;  %708 = vmatpush.msrb.mxu1 %v1696_v33 }
 0x103   :  { %728 = vmatpush.msrb.mxu2 %v1710_v38  ;;  %748 = vmatpush.msrb.mxu3 %v1704_v36 }
 0x104   :  { %689 = vmatpush.msra.mxu0 %v1712_v39  ;;  %709 = vmatpush.msrb.mxu1 %v1708_v37 }
 0x105   :  { %729 = vmatpush.msrb.mxu2 %v1722_v42  ;;  %749 = vmatpush.msrb.mxu3 %v1716_v40 }
 0x106   :  { %690 = vmatpush.msra.mxu0 %v1731_v44  ;;  %710 = vmatpush.msrb.mxu1 %v1720_v41 }
 0x107   :  { %730 = vmatpush.msrb.mxu2 %v1741_v47  ;;  %750 = vmatpush.msrb.mxu3 %v1734_v45 }
 0x108   :  { %691 = vmatpush.msra.mxu0 %v1745_v48  ;;  %711 = vmatpush.msrb.mxu1 %v1739_v46 }
 0x109   :  { %731 = vmatpush.msrb.mxu2 %v1753_v51  ;;  %751 = vmatpush.msrb.mxu3 %v1747_v49 }
 0x10a   :  { %692 = vmatpush.msra.mxu0 %v1755_v52  ;;  %712 = vmatpush.msrb.mxu1 %v1751_v50 }
 0x10b   :  { %732 = vmatpush.msrb.mxu2 %v1765_v55  ;;  %752 = vmatpush.msrb.mxu3 %v2673_v53 }
 0x10c   :  { %693 = vmatpush.msra.mxu0 %v2674_v54  ;;  %713 = vmatpush.msrb.mxu1 %v2675_v56 }
 0x10d   :  { %733 = vmatpush.msrb.mxu2 %v2676_v60  ;;  %753 = vmatpush.msrb.mxu3 %v2677_v61  ;;  %v2697_v61 = vld [vmem:[#allocation39_spill] sm:$0xff] }
 0x10e   :  { %694 = vmatpush.msra.mxu0 %v2678_v63  ;;  %714 = vmatpush.msrb.mxu1 %v2679_v1  ;;  %v2696_v63 = vld [vmem:[#allocation38_spill] sm:$0xff] }
 0x10f   :  { %734 = vmatpush.msrb.mxu2 %v2680_v6  ;;  %754 = vmatpush.msrb.mxu3 %v2681_v17  ;;  %v2694_v17 = vld [vmem:[#allocation37_spill] sm:$0xff]  ;;  %v2695_v6 = vld [vmem:[#allocation36_spill] sm:$0xff] }
 0x110   :  { %695 = vmatpush.msra.mxu0 %v2682_v43  ;;  %715 = vmatpush.msrb.mxu1 %v2683_v3  ;;  %v2693_v43 = vld [vmem:[#allocation31_spill] sm:$0xff] }
 0x111   :  { %735 = vmatpush.msrb.mxu2 %v2684_v4  ;;  %755 = vmatpush.msrb.mxu3 %v2685_v5 }
 0x112   :  { %696 = vmatpush.msra.mxu0 %v2686_v57  ;;  %716 = vmatpush.msrb.mxu1 %v2687_v0 }
 0x113   :  { %736 = vmatpush.msrb.mxu2 %v2688_v7  ;;  %756 = vmatpush.msrb.mxu3 %v2689_v59 }
 0x114   :  { %697 = vmatpush.msra.mxu0 %v2690_v30  ;;  %717 = vmatpush.msrb.mxu1 %v2691_v2 }
 0x115   :  { %737 = vmatpush.msrb.mxu2 %v2692_v62  ;;  %757 = vmatpush.msrb.mxu3 %v2693_v43 }
 0x171   :  { %v487_v3 = vpop.f32.mrf.mxu0  ;;  %v507_v4 = vpop.f32.mrf.mxu1 }
 0x172   :  { %v550_v5 = vadd.f32 %v487_v3, %v2694_v17  ;;  %v551_v57 = vadd.f32 %v507_v4, %v2695_v6 }
 0x174   :  { %v554_v1 = vmul.f32 0.5, %v550_v5  ;;  %v555_v0 = vmul.f32 0.5, %v551_v57 }
 0x176   :  { %1322 = vtanh.f32 %v554_v1 }
 0x177   :  { %1324 = vtanh.f32 %v555_v0 }
 0x178   :  { %v527_v7 = vpop.f32.mrf.mxu2  ;;  %v547_v59 = vpop.f32.mrf.mxu3 }
 0x179   :  { %v552_v30 = vadd.f32 %v527_v7, %v2696_v63  ;;  %v553_v2 = vadd.f32 %v547_v59, %v2697_v61 }
 0x17b   :  { %v556_v60 = vmul.f32 0.5, %v552_v30  ;;  %1326 = vtanh.f32 %v553_v2 }
 0x17c   :  { %v1323_v62 = vpop.eup %1322 }
 0x17d   :  { %v1325_v43 = vpop.eup %1324  ;;  %v560_v56 = vmul.f32 0.5, %v1323_v62  ;;  %1328 = vtanh.f32 %v556_v60 }
 0x17e   :  { %v561_v54 = vmul.f32 0.5, %v1325_v43 }
 0x17f   :  { %v563_v17 = vadd.f32 0.5, %v560_v56 }
 0x180   :  { %v564_v3 = vadd.f32 0.5, %v561_v54 }
 0x181   :  { %v1327_v6 = vpop.eup %1326 }
 0x182   :  { %v567_v4 = vmul.f32 %v564_v3, %v2046_v58  ;;  %v568_v1 = vmul.f32 %v1327_v6, %v563_v17 }
 0x183   :  { %v1329_v5 = vpop.eup %1328 }
 0x184   :  { %v2118_v57 = vadd.f32 %v568_v1, %v567_v4  ;;  %v562_v63 = vmul.f32 0.5, %v1329_v5  ;;  %v2193_v5 = vld [vmem:[#allocation3 + $0x1e0] sm:$0xff] }
 0x186   :  { %1330 = vtanh.f32 %v2118_v57  ;;  %v565_v61 = vadd.f32 0.5, %v562_v63  ;;  %v2196_v63 = vld [vmem:[#allocation3 + $0x1e8] sm:$0xff] }
 0x18c   :  { %v1331_v0 = vpop.eup %1330 }
 0x18d   :  { %v571_v7 = vmul.f32 %v1331_v0, %v565_v61  ;;  %v2202_v61 = vld [vmem:[#allocation3 + $0x1f8] sm:$0xff]  ;;  %v2205_v0 = vld [vmem:[#allocation3 + $0x1c0] sm:$0xff] }
 0x18f   :  { %592 = vmatmul.f32.vlgmr.msrb.gmra.mxu0 %v571_v7  ;;  %612 = vmatmul.f32.vlgmr.msra.gmra.mxu1 %v571_v7 }
 0x190   :  { %632 = vmatmul.f32.vlgmr.msra.gmra.mxu2 %v571_v7  ;;  %652 = vmatmul.f32.vlgmr.msra.gmra.mxu3 %v571_v7  ;;  %v2208_v7 = vld [vmem:[#allocation3 + $0x1c8] sm:$0xff] }
 0x191   :  { %788 = vmatpush.msrb.mxu0 %v1618_v10  ;;  %808 = vmatpush.msra.mxu1 %v1610_v8  ;;  %v2698_v8 = vld [vmem:[#allocation14_spill] sm:$0xff]  ;;  %v2700_v10 = vld [vmem:[#allocation19_spill] sm:$0xff] }
 0x192   :  { %828 = vmatpush.msra.mxu2 %v1624_v12  ;;  %848 = vmatpush.msra.mxu3 %v1616_v9  ;;  %v2699_v9 = vld [vmem:[#allocation13_spill] sm:$0xff]  ;;  %v2702_v12 = vld [vmem:[#allocation15_spill] sm:$0xff] }
 0x193   :  { %789 = vmatpush.msrb.mxu0 %v1628_v13  ;;  %809 = vmatpush.msra.mxu1 %v1622_v11  ;;  %v2701_v11 = vld [vmem:[#allocation16_spill] sm:$0xff]  ;;  %v2703_v13 = vld [vmem:[#allocation17_spill] sm:$0xff] }
 0x194   :  { %829 = vmatpush.msra.mxu2 %v1636_v16  ;;  %849 = vmatpush.msra.mxu3 %v1630_v14  ;;  %v2704_v14 = vld [vmem:[#allocation23_spill] sm:$0xff]  ;;  %v2706_v16 = vld [vmem:[#allocation18_spill] sm:$0xff] }
 0x195   :  { %790 = vmatpush.msrb.mxu0 %v1645_v18  ;;  %810 = vmatpush.msra.mxu1 %v1634_v15  ;;  %v2705_v15 = vld [vmem:[#allocation20_spill] sm:$0xff]  ;;  %v2707_v18 = vld [vmem:[#allocation21_spill] sm:$0xff] }
 0x196   :  { %830 = vmatpush.msra.mxu2 %v1655_v21  ;;  %850 = vmatpush.msra.mxu3 %v1648_v19  ;;  %v2708_v19 = vld [vmem:[#allocation27_spill] sm:$0xff]  ;;  %v2710_v21 = vld [vmem:[#allocation22_spill] sm:$0xff] }
 0x197   :  { %791 = vmatpush.msrb.mxu0 %v1659_v22  ;;  %811 = vmatpush.msra.mxu1 %v1653_v20  ;;  %v2709_v20 = vld [vmem:[#allocation24_spill] sm:$0xff]  ;;  %v2711_v22 = vld [vmem:[#allocation25_spill] sm:$0xff] }
 0x198   :  { %831 = vmatpush.msra.mxu2 %v1667_v25  ;;  %851 = vmatpush.msra.mxu3 %v1661_v23  ;;  %v2712_v23 = vld [vmem:[#allocation30_spill] sm:$0xff] }
 0x199   :  { %792 = vmatpush.msrb.mxu0 %v1669_v26  ;;  %812 = vmatpush.msra.mxu1 %v1665_v24  ;;  %v2713_v24 = vld [vmem:[#allocation28_spill] sm:$0xff]  ;;  %v2714_v25 = vld [vmem:[#allocation26_spill] sm:$0xff]  ;;  %v2715_v26 = vld [vmem:[#allocation29_spill] sm:$0xff] }
 0x19a   :  { %832 = vmatpush.msra.mxu2 %v1679_v29  ;;  %852 = vmatpush.msra.mxu3 %v1673_v27  ;;  %v2716_v27 = vld [vmem:[#allocation32_spill] sm:$0xff] }
 0x19b   :  { %793 = vmatpush.msrb.mxu0 %v1688_v31  ;;  %813 = vmatpush.msra.mxu1 %v1677_v28  ;;  %v2717_v28 = vld [vmem:[#allocation31_spill] sm:$0xff] }
 0x19c   :  { %833 = vmatpush.msra.mxu2 %v1698_v34  ;;  %853 = vmatpush.msra.mxu3 %v1691_v32  ;;  %v2718_v32 = vld [vmem:[#allocation44_spill] sm:$0xff] }
 0x19d   :  { %794 = vmatpush.msrb.mxu0 %v1702_v35  ;;  %814 = vmatpush.msra.mxu1 %v1696_v33  ;;  %v2719_v34 = vld [vmem:[#allocation40_spill] sm:$0xff] }
 0x19e   :  { %834 = vmatpush.msra.mxu2 %v1710_v38  ;;  %854 = vmatpush.msra.mxu3 %v1704_v36 }
 0x19f   :  { %795 = vmatpush.msrb.mxu0 %v1712_v39  ;;  %815 = vmatpush.msra.mxu1 %v1708_v37 }
 0x1a0   :  { %835 = vmatpush.msra.mxu2 %v1722_v42  ;;  %855 = vmatpush.msra.mxu3 %v1716_v40  ;;  %v2720_v40 = vld [vmem:[#allocation41_spill] sm:$0xff]  ;;  %v2721_v42 = vld [vmem:[#allocation42_spill] sm:$0xff] }
 0x1a1   :  { %796 = vmatpush.msrb.mxu0 %v1731_v44  ;;  %816 = vmatpush.msra.mxu1 %v1720_v41 }
 0x1a2   :  { %836 = vmatpush.msra.mxu2 %v1741_v47  ;;  %856 = vmatpush.msra.mxu3 %v1734_v45 }
 0x1a3   :  { %797 = vmatpush.msrb.mxu0 %v1745_v48  ;;  %817 = vmatpush.msra.mxu1 %v1739_v46 }
 0x1a4   :  { %837 = vmatpush.msra.mxu2 %v1753_v51  ;;  %857 = vmatpush.msra.mxu3 %v1747_v49 }
 0x1a5   :  { %798 = vmatpush.msrb.mxu0 %v1755_v52  ;;  %818 = vmatpush.msra.mxu1 %v1751_v50 }
 0x1a6   :  { %838 = vmatpush.msra.mxu2 %v1765_v55  ;;  %858 = vmatpush.msra.mxu3 %v2673_v53 }
 0x1a7   :  { %799 = vmatpush.msrb.mxu0 %v2698_v8  ;;  %819 = vmatpush.msra.mxu1 %v2699_v9 }
 0x1a8   :  { %839 = vmatpush.msra.mxu2 %v2700_v10  ;;  %859 = vmatpush.msra.mxu3 %v2701_v11 }
 0x1a9   :  { %800 = vmatpush.msrb.mxu0 %v2702_v12  ;;  %820 = vmatpush.msra.mxu1 %v2703_v13 }
 0x1aa   :  { %840 = vmatpush.msra.mxu2 %v2704_v14  ;;  %860 = vmatpush.msra.mxu3 %v2705_v15 }
 0x1ab   :  { %801 = vmatpush.msrb.mxu0 %v2706_v16  ;;  %821 = vmatpush.msra.mxu1 %v2707_v18 }
 0x1ac   :  { %841 = vmatpush.msra.mxu2 %v2708_v19  ;;  %861 = vmatpush.msra.mxu3 %v2709_v20 }
 0x1ad   :  { %802 = vmatpush.msrb.mxu0 %v2710_v21  ;;  %822 = vmatpush.msra.mxu1 %v2711_v22 }
 0x1ae   :  { %842 = vmatpush.msra.mxu2 %v2712_v23  ;;  %862 = vmatpush.msra.mxu3 %v2713_v24 }
 0x1af   :  { %803 = vmatpush.msrb.mxu0 %v2714_v25  ;;  %823 = vmatpush.msra.mxu1 %v2715_v26 }
 0x1b0   :  { %843 = vmatpush.msra.mxu2 %v2716_v27  ;;  %863 = vmatpush.msra.mxu3 %v2717_v28 }
 0x20c   :  { %v593_v29 = vpop.f32.mrf.mxu0  ;;  %v613_v31 = vpop.f32.mrf.mxu1 }
 0x20d   :  { %v656_v33 = vadd.f32 %v593_v29, %v2718_v32  ;;  %v657_v35 = vadd.f32 %v613_v31, %v2719_v34  ;;  %v2211_v29 = vld [vmem:[#allocation3 + $0x1d0] sm:$0xff]  ;;  %v2214_v31 = vld [vmem:[#allocation3 + $0x1d8] sm:$0xff]  ;;  %v2217_v32 = vld [vmem:[#allocation3 + $0x1a0] sm:$0xff] }
 0x20e   :  { %v2223_v34 = vld [vmem:[#allocation3 + $0x1b0] sm:$0xff] }
 0x20f   :  { %v660_v36 = vmul.f32 0.5, %v656_v33  ;;  %v661_v37 = vmul.f32 0.5, %v657_v35  ;;  %v2220_v33 = vld [vmem:[#allocation3 + $0x1a8] sm:$0xff]  ;;  %v2226_v35 = vld [vmem:[#allocation3 + $0x1b8] sm:$0xff] }
 0x211   :  { %1332 = vtanh.f32 %v660_v36  ;;  %v2229_v36 = vld [vmem:[#allocation3 + $0x180] sm:$0xff] }
 0x212   :  { %1334 = vtanh.f32 %v661_v37  ;;  %v2232_v37 = vld [vmem:[#allocation3 + $0x188] sm:$0xff] }
 0x213   :  { %v633_v38 = vpop.f32.mrf.mxu2  ;;  %v653_v39 = vpop.f32.mrf.mxu3 }
 0x214   :  { %v658_v41 = vadd.f32 %v633_v38, %v2720_v40  ;;  %v659_v44 = vadd.f32 %v653_v39, %v2721_v42  ;;  %v2235_v38 = vld [vmem:[#allocation3 + $0x190] sm:$0xff]  ;;  %v2238_v39 = vld [vmem:[#allocation3 + $0x198] sm:$0xff]  ;;  %v2241_v40 = vld [vmem:[#allocation3 + $0x160] sm:$0xff] }
 0x215   :  { %v2247_v42 = vld [vmem:[#allocation3 + $0x170] sm:$0xff] }
 0x216   :  { %v662_v45 = vmul.f32 0.5, %v658_v41  ;;  %1336 = vtanh.f32 %v659_v44  ;;  %v2244_v41 = vld [vmem:[#allocation3 + $0x168] sm:$0xff]  ;;  %v2250_v44 = vld [vmem:[#allocation3 + $0x178] sm:$0xff] }
 0x217   :  { %v1333_v46 = vpop.eup %1332 }
 0x218   :  { %v1335_v58 = vpop.eup %1334  ;;  %v666_v54 = vmul.f32 0.5, %v1333_v46  ;;  %1338 = vtanh.f32 %v662_v45  ;;  %v2253_v45 = vld [vmem:[#allocation3 + $0x140] sm:$0xff]  ;;  %v2256_v46 = vld [vmem:[#allocation3 + $0x148] sm:$0xff] }
 0x219   :  { %v667_v56 = vmul.f32 0.5, %v1335_v58  ;;  %v2259_v58 = vld [vmem:[#allocation3 + $0x150] sm:$0xff] }
 0x21a   :  { %v669_v60 = vadd.f32 0.5, %v666_v54  ;;  %v2262_v54 = vld [vmem:[#allocation3 + $0x158] sm:$0xff] }
 0x21b   :  { %v670_v43 = vadd.f32 0.5, %v667_v56  ;;  %v2265_v56 = vld [vmem:[#allocation3 + $0x120] sm:$0xff] }
 0x21c   :  { %v1337_v59 = vpop.eup %1336 }
 0x21d   :  { %v673_v30 = vmul.f32 %v670_v43, %v2118_v57  ;;  %v674_v2 = vmul.f32 %v1337_v59, %v669_v60  ;;  %v2199_v57 = vld [vmem:[#allocation3 + $0x1f0] sm:$0xff]  ;;  %v2268_v60 = vld [vmem:[#allocation3 + $0x128] sm:$0xff]  ;;  %v2274_v59 = vld [vmem:[#allocation3 + $0x138] sm:$0xff] }
 0x21e   :  { %v1339_v62 = vpop.eup %1338  ;;  %v2271_v43 = vld [vmem:[#allocation3 + $0x130] sm:$0xff] }
 0x21f   :  { %v2190_v17 = vadd.f32 %v674_v2, %v673_v30  ;;  %v668_v3 = vmul.f32 0.5, %v1339_v62  ;;  %v2277_v30 = vld [vmem:[#allocation3 + $0x100] sm:$0xff]  ;;  %v2280_v2 = vld [vmem:[#allocation3 + $0x108] sm:$0xff]  ;;  %v2283_v62 = vld [vmem:[#allocation3 + $0x110] sm:$0xff] }
 0x220   :  { %2722 = vst [vmem:[#allocation12_spill] sm:$0xff] %v2283_v62 }
 0x221   :  { %1340 = vtanh.f32 %v2190_v17  ;;  %v671_v6 = vadd.f32 0.5, %v668_v3  ;;  %v2286_v3 = vld [vmem:[#allocation3 + $0x118] sm:$0xff] }
 0x227   :  { %v1341_v4 = vpop.eup %1340 }
 0x228   :  { %v677_v1 = vmul.f32 %v1341_v4, %v671_v6  ;;  %v2289_v6 = vld [vmem:[#allocation3 + $0xe0] sm:$0xff]  ;;  %v2292_v4 = vld [vmem:[#allocation3 + $0xe8] sm:$0xff] }
 0x22a   :  { %698 = vmatmul.f32.vlgmr.msra.gmra.mxu0 %v677_v1  ;;  %718 = vmatmul.f32.vlgmr.msrb.gmra.mxu1 %v677_v1 }
 0x22b   :  { %738 = vmatmul.f32.vlgmr.msrb.gmra.mxu2 %v677_v1  ;;  %758 = vmatmul.f32.vlgmr.msrb.gmra.mxu3 %v677_v1  ;;  %v2296_v1 = vld [vmem:[#allocation3 + $0xf8] sm:$0xff] }
 0x22c   :  { %894 = vmatpush.msra.mxu0 %v2193_v5  ;;  %914 = vmatpush.msrb.mxu1 %v2196_v63 }
 0x22d   :  { %934 = vmatpush.msrb.mxu2 %v2199_v57  ;;  %954 = vmatpush.msrb.mxu3 %v2202_v61 }
 0x22e   :  { %895 = vmatpush.msra.mxu0 %v2205_v0  ;;  %915 = vmatpush.msrb.mxu1 %v2208_v7 }
 0x22f   :  { %935 = vmatpush.msrb.mxu2 %v2211_v29  ;;  %955 = vmatpush.msrb.mxu3 %v2214_v31 }
 0x230   :  { %896 = vmatpush.msra.mxu0 %v2217_v32  ;;  %916 = vmatpush.msrb.mxu1 %v2220_v33 }
 0x231   :  { %936 = vmatpush.msrb.mxu2 %v2223_v34  ;;  %956 = vmatpush.msrb.mxu3 %v2226_v35 }
 0x232   :  { %897 = vmatpush.msra.mxu0 %v2229_v36  ;;  %917 = vmatpush.msrb.mxu1 %v2232_v37 }
 0x233   :  { %937 = vmatpush.msrb.mxu2 %v2235_v38  ;;  %957 = vmatpush.msrb.mxu3 %v2238_v39 }
 0x234   :  { %898 = vmatpush.msra.mxu0 %v2241_v40  ;;  %918 = vmatpush.msrb.mxu1 %v2244_v41 }
 0x235   :  { %938 = vmatpush.msrb.mxu2 %v2247_v42  ;;  %958 = vmatpush.msrb.mxu3 %v2250_v44 }
 0x236   :  { %899 = vmatpush.msra.mxu0 %v2253_v45  ;;  %919 = vmatpush.msrb.mxu1 %v2256_v46 }
 0x237   :  { %939 = vmatpush.msrb.mxu2 %v2259_v58  ;;  %959 = vmatpush.msrb.mxu3 %v2262_v54 }
 0x238   :  { %900 = vmatpush.msra.mxu0 %v2265_v56  ;;  %920 = vmatpush.msrb.mxu1 %v2268_v60 }
 0x239   :  { %940 = vmatpush.msrb.mxu2 %v2271_v43  ;;  %960 = vmatpush.msrb.mxu3 %v2274_v59 }
 0x23a   :  { %901 = vmatpush.msra.mxu0 %v2277_v30  ;;  %921 = vmatpush.msrb.mxu1 %v2280_v2 }
 0x23b   :  { %941 = vmatpush.msrb.mxu2 %v2283_v62  ;;  %961 = vmatpush.msrb.mxu3 %v2286_v3  ;;  %v2300_v62 = vld [vmem:[#allocation3 + $0xc8] sm:$0xff] }
 0x23c   :  { %902 = vmatpush.msra.mxu0 %v2289_v6  ;;  %922 = vmatpush.msrb.mxu1 %v2292_v4 }
 0x23d   :  { %942 = vmatpush.msrb.mxu2 %v1741_v47  ;;  %962 = vmatpush.msrb.mxu3 %v2296_v1 }
 0x23e   :  { %903 = vmatpush.msra.mxu0 %v1745_v48  ;;  %923 = vmatpush.msrb.mxu1 %v2300_v62 }
 0x23f   :  { %943 = vmatpush.msrb.mxu2 %v1753_v51  ;;  %963 = vmatpush.msrb.mxu3 %v1747_v49  ;;  %v2723_v49 = vld [vmem:[#allocation48_spill] sm:$0xff]  ;;  %v2724_v51 = vld [vmem:[#allocation43_spill] sm:$0xff] }
 0x240   :  { %904 = vmatpush.msra.mxu0 %v1755_v52  ;;  %924 = vmatpush.msrb.mxu1 %v1751_v50 }
 0x241   :  { %944 = vmatpush.msrb.mxu2 %v1765_v55  ;;  %964 = vmatpush.msrb.mxu3 %v2673_v53 }
 0x242   :  { %905 = vmatpush.msra.mxu0 %v2698_v8  ;;  %925 = vmatpush.msrb.mxu1 %v2699_v9 }
 0x243   :  { %945 = vmatpush.msrb.mxu2 %v2700_v10  ;;  %965 = vmatpush.msrb.mxu3 %v2701_v11  ;;  %v2725_v10 = vld [vmem:[#allocation45_spill] sm:$0xff] }
 0x244   :  { %906 = vmatpush.msra.mxu0 %v2702_v12  ;;  %926 = vmatpush.msrb.mxu1 %v2703_v13  ;;  %v2726_v12 = vld [vmem:[#allocation46_spill] sm:$0xff] }
 0x245   :  { %946 = vmatpush.msrb.mxu2 %v2704_v14  ;;  %966 = vmatpush.msrb.mxu3 %v2705_v15 }
 0x246   :  { %907 = vmatpush.msra.mxu0 %v2706_v16  ;;  %927 = vmatpush.msrb.mxu1 %v2707_v18 }
 0x247   :  { %947 = vmatpush.msrb.mxu2 %v2708_v19  ;;  %967 = vmatpush.msrb.mxu3 %v2709_v20 }
 0x248   :  { %908 = vmatpush.msra.mxu0 %v2710_v21  ;;  %928 = vmatpush.msrb.mxu1 %v2711_v22 }
 0x249   :  { %948 = vmatpush.msrb.mxu2 %v2712_v23  ;;  %968 = vmatpush.msrb.mxu3 %v2713_v24 }
 0x24a   :  { %909 = vmatpush.msra.mxu0 %v2714_v25  ;;  %929 = vmatpush.msrb.mxu1 %v2715_v26 }
 0x24b   :  { %949 = vmatpush.msrb.mxu2 %v2716_v27  ;;  %969 = vmatpush.msrb.mxu3 %v2717_v28 }
 0x2a7   :  { %v699_v47 = vpop.f32.mrf.mxu0  ;;  %v719_v48 = vpop.f32.mrf.mxu1 }
 0x2a8   :  { %v762_v50 = vadd.f32 %v699_v47, %v2723_v49  ;;  %v763_v52 = vadd.f32 %v719_v48, %v2724_v51  ;;  %v2371_v49 = vld [vmem:[#allocation3 + $0xf0] sm:$0xff] }
 0x2a9   :  { %v2379_v51 = vld [vmem:[#allocation3 + $0xd0] sm:$0xff] }
 0x2aa   :  { %v766_v55 = vmul.f32 0.5, %v762_v50  ;;  %v767_v53 = vmul.f32 0.5, %v763_v52  ;;  %v2375_v50 = vld [vmem:[#allocation3 + $0xc0] sm:$0xff]  ;;  %v2382_v52 = vld [vmem:[#allocation3 + $0xd8] sm:$0xff] }
 0x2ac   :  { %1342 = vtanh.f32 %v766_v55  ;;  %v2385_v55 = vld [vmem:[#allocation3 + $0xa0] sm:$0xff] }
 0x2ad   :  { %1344 = vtanh.f32 %v767_v53  ;;  %v2388_v53 = vld [vmem:[#allocation3 + $0xa8] sm:$0xff] }
 0x2ae   :  { %v739_v8 = vpop.f32.mrf.mxu2  ;;  %v759_v9 = vpop.f32.mrf.mxu3 }
 0x2af   :  { %v764_v11 = vadd.f32 %v739_v8, %v2725_v10  ;;  %v765_v13 = vadd.f32 %v759_v9, %v2726_v12  ;;  %v2391_v8 = vld [vmem:[#allocation3 + $0xb0] sm:$0xff]  ;;  %v2394_v9 = vld [vmem:[#allocation3 + $0xb8] sm:$0xff]  ;;  %v2397_v10 = vld [vmem:[#allocation3 + $0x80] sm:$0xff] }
 0x2b0   :  { %2728 = vst [vmem:[#allocation37_spill] sm:$0xff] %v2397_v10  ;;  %v2403_v12 = vld [vmem:[#allocation3 + $0x90] sm:$0xff] }
 0x2b1   :  { %v768_v14 = vmul.f32 0.5, %v764_v11  ;;  %1346 = vtanh.f32 %v765_v13  ;;  %v2400_v11 = vld [vmem:[#allocation3 + $0x88] sm:$0xff]  ;;  %2730 = vst [vmem:[#allocation38_spill] sm:$0xff] %v2403_v12  ;;  %v2406_v13 = vld [vmem:[#allocation3 + $0x98] sm:$0xff] }
 0x2b2   :  { %v1343_v15 = vpop.eup %1342  ;;  %2729 = vst [vmem:[#allocation36_spill] sm:$0xff] %v2400_v11 }
 0x2b3   :  { %v1345_v16 = vpop.eup %1344  ;;  %v772_v18 = vmul.f32 0.5, %v1343_v15  ;;  %1348 = vtanh.f32 %v768_v14  ;;  %2731 = vst [vmem:[#allocation39_spill] sm:$0xff] %v2406_v13  ;;  %v2409_v14 = vld [vmem:[#allocation3 + $0x60] sm:$0xff]  ;;  %v2412_v15 = vld [vmem:[#allocation3 + $0x68] sm:$0xff] }
 0x2b4   :  { %v773_v19 = vmul.f32 0.5, %v1345_v16  ;;  %2732 = vst [vmem:[#allocation14_spill] sm:$0xff] %v2409_v14  ;;  %v2415_v16 = vld [vmem:[#allocation3 + $0x70] sm:$0xff] }
 0x2b5   :  { %v775_v20 = vadd.f32 0.5, %v772_v18  ;;  %2733 = vst [vmem:[#allocation13_spill] sm:$0xff] %v2412_v15  ;;  %v2418_v18 = vld [vmem:[#allocation3 + $0x78] sm:$0xff] }
 0x2b6   :  { %v776_v21 = vadd.f32 0.5, %v773_v19  ;;  %2734 = vst [vmem:[#allocation19_spill] sm:$0xff] %v2415_v16  ;;  %v2421_v19 = vld [vmem:[#allocation3 + $0x40] sm:$0xff] }
 0x2b7   :  { %v1347_v22 = vpop.eup %1346  ;;  %2735 = vst [vmem:[#allocation16_spill] sm:$0xff] %v2418_v18 }
 0x2b8   :  { %v779_v23 = vmul.f32 %v776_v21, %v2190_v17  ;;  %v780_v24 = vmul.f32 %v1347_v22, %v775_v20  ;;  %v2727_v17 = vld [vmem:[#allocation12_spill] sm:$0xff]  ;;  %2736 = vst [vmem:[#allocation15_spill] sm:$0xff] %v2421_v19  ;;  %v2424_v20 = vld [vmem:[#allocation3 + $0x48] sm:$0xff]  ;;  %v2430_v22 = vld [vmem:[#allocation3 + $0x58] sm:$0xff] }
 0x2b9   :  { %v1349_v25 = vpop.eup %1348  ;;  %2737 = vst [vmem:[#allocation17_spill] sm:$0xff] %v2424_v20  ;;  %v2427_v21 = vld [vmem:[#allocation3 + $0x50] sm:$0xff] }
 0x2ba   :  { %v2334_v26 = vadd.f32 %v780_v24, %v779_v23  ;;  %v774_v27 = vmul.f32 0.5, %v1349_v25  ;;  %2738 = vst [vmem:[#allocation23_spill] sm:$0xff] %v2427_v21  ;;  %v2433_v23 = vld [vmem:[#allocation3 + $0x20] sm:$0xff]  ;;  %v2436_v24 = vld [vmem:[#allocation3 + $0x28] sm:$0xff]  ;;  %v2439_v25 = vld [vmem:[#allocation3 + $0x30] sm:$0xff] }
 0x2bb   :  { %2739 = vst [vmem:[#allocation20_spill] sm:$0xff] %v2430_v22 }
 0x2bc   :  { %1350 = vtanh.f32 %v2334_v26  ;;  %v777_v28 = vadd.f32 0.5, %v774_v27  ;;  %2740 = vst [vmem:[#allocation18_spill] sm:$0xff] %v2433_v23  ;;  %v2442_v27 = vld [vmem:[#allocation3 + $0x38] sm:$0xff] }
 0x2bd   :  { %2741 = vst [vmem:[#allocation21_spill] sm:$0xff] %v2436_v24 }
 0x2be   :  { %2742 = vst [vmem:[#allocation27_spill] sm:$0xff] %v2439_v25 }
 0x2bf   :  { %2743 = vst [vmem:[#allocation24_spill] sm:$0xff] %v2442_v27 }
 0x2c2   :  { %v1351_v47 = vpop.eup %1350 }
 0x2c3   :  { %v783_v48 = vmul.f32 %v1351_v47, %v777_v28  ;;  %v2445_v28 = vld [vmem:[#allocation3] sm:$0xff]  ;;  %v2448_v47 = vld [vmem:[#allocation3 + $0x8] sm:$0xff] }
 0x2c4   :  { %2744 = vst [vmem:[#allocation22_spill] sm:$0xff] %v2445_v28 }
 0x2c5   :  { %804 = vmatmul.f32.vlgmr.msrb.gmra.mxu0 %v783_v48  ;;  %824 = vmatmul.f32.vlgmr.msra.gmra.mxu1 %v783_v48  ;;  %2745 = vst [vmem:[#allocation25_spill] sm:$0xff] %v2448_v47 }
 0x2c6   :  { %844 = vmatmul.f32.vlgmr.msra.gmra.mxu2 %v783_v48  ;;  %864 = vmatmul.f32.vlgmr.msra.gmra.mxu3 %v783_v48  ;;  %v2451_v48 = vld [vmem:[#allocation3 + $0x10] sm:$0xff] }
 0x2c7   :  { %1000 = vmatpush.msrb.mxu0 %v2193_v5  ;;  %1020 = vmatpush.msra.mxu1 %v2196_v63  ;;  %2746 = vst [vmem:[#allocation30_spill] sm:$0xff] %v2451_v48 }
 0x2c8   :  { %1040 = vmatpush.msra.mxu2 %v2199_v57  ;;  %1060 = vmatpush.msra.mxu3 %v2202_v61 }
 0x2c9   :  { %1001 = vmatpush.msrb.mxu0 %v2205_v0  ;;  %1021 = vmatpush.msra.mxu1 %v2208_v7 }
 0x2ca   :  { %1041 = vmatpush.msra.mxu2 %v2211_v29  ;;  %1061 = vmatpush.msra.mxu3 %v2214_v31 }
 0x2cb   :  { %1002 = vmatpush.msrb.mxu0 %v2217_v32  ;;  %1022 = vmatpush.msra.mxu1 %v2220_v33 }
 0x2cc   :  { %1042 = vmatpush.msra.mxu2 %v2223_v34  ;;  %1062 = vmatpush.msra.mxu3 %v2226_v35 }
 0x2cd   :  { %1003 = vmatpush.msrb.mxu0 %v2229_v36  ;;  %1023 = vmatpush.msra.mxu1 %v2232_v37 }
 0x2ce   :  { %1043 = vmatpush.msra.mxu2 %v2235_v38  ;;  %1063 = vmatpush.msra.mxu3 %v2238_v39 }
 0x2cf   :  { %1004 = vmatpush.msrb.mxu0 %v2241_v40  ;;  %1024 = vmatpush.msra.mxu1 %v2244_v41 }
 0x2d0   :  { %1044 = vmatpush.msra.mxu2 %v2247_v42  ;;  %1064 = vmatpush.msra.mxu3 %v2250_v44 }
 0x2d1   :  { %1005 = vmatpush.msrb.mxu0 %v2253_v45  ;;  %1025 = vmatpush.msra.mxu1 %v2256_v46 }
 0x2d2   :  { %1045 = vmatpush.msra.mxu2 %v2259_v58  ;;  %1065 = vmatpush.msra.mxu3 %v2262_v54 }
 0x2d3   :  { %1006 = vmatpush.msrb.mxu0 %v2265_v56  ;;  %1026 = vmatpush.msra.mxu1 %v2268_v60 }
 0x2d4   :  { %1046 = vmatpush.msra.mxu2 %v2271_v43  ;;  %1066 = vmatpush.msra.mxu3 %v2274_v59 }
 0x2d5   :  { %1007 = vmatpush.msrb.mxu0 %v2277_v30  ;;  %1027 = vmatpush.msra.mxu1 %v2280_v2 }
 0x2d6   :  { %1047 = vmatpush.msra.mxu2 %v2727_v17  ;;  %1067 = vmatpush.msra.mxu3 %v2286_v3 }
 0x2d7   :  { %1008 = vmatpush.msrb.mxu0 %v2289_v6  ;;  %1028 = vmatpush.msra.mxu1 %v2292_v4 }
 0x2d8   :  { %1048 = vmatpush.msra.mxu2 %v2371_v49  ;;  %1068 = vmatpush.msra.mxu3 %v2296_v1 }
 0x2d9   :  { %1009 = vmatpush.msrb.mxu0 %v2375_v50  ;;  %1029 = vmatpush.msra.mxu1 %v2300_v62 }
 0x2da   :  { %1049 = vmatpush.msra.mxu2 %v2379_v51  ;;  %1069 = vmatpush.msra.mxu3 %v2382_v52 }
 0x2db   :  { %1010 = vmatpush.msrb.mxu0 %v2385_v55  ;;  %1030 = vmatpush.msra.mxu1 %v2388_v53 }
 0x2dc   :  { %1050 = vmatpush.msra.mxu2 %v2391_v8  ;;  %1070 = vmatpush.msra.mxu3 %v2394_v9 }
 0x2dd   :  { %1011 = vmatpush.msrb.mxu0 %v2397_v10  ;;  %1031 = vmatpush.msra.mxu1 %v2400_v11 }
 0x2de   :  { %1051 = vmatpush.msra.mxu2 %v2403_v12  ;;  %1071 = vmatpush.msra.mxu3 %v2406_v13 }
 0x2df   :  { %1012 = vmatpush.msrb.mxu0 %v2409_v14  ;;  %1032 = vmatpush.msra.mxu1 %v2412_v15  ;;  %v2751_v14 = vld [vmem:[#allocation50_spill] sm:$0xff] }
 0x2e0   :  { %1052 = vmatpush.msra.mxu2 %v2415_v16  ;;  %1072 = vmatpush.msra.mxu3 %v2418_v18  ;;  %v2750_v16 = vld [vmem:[#allocation49_spill] sm:$0xff] }
 0x2e1   :  { %1013 = vmatpush.msrb.mxu0 %v2421_v19  ;;  %1033 = vmatpush.msra.mxu1 %v2424_v20 }
 0x2e2   :  { %1053 = vmatpush.msra.mxu2 %v2427_v21  ;;  %1073 = vmatpush.msra.mxu3 %v2430_v22  ;;  %v2748_v22 = vld [vmem:[#allocation52_spill] sm:$0xff]  ;;  %v2749_v21 = vld [vmem:[#allocation47_spill] sm:$0xff] }
 0x2e3   :  { %1014 = vmatpush.msrb.mxu0 %v2433_v23  ;;  %1034 = vmatpush.msra.mxu1 %v2436_v24  ;;  %v2454_v24 = vld [vmem:[#allocation3 + $0x18] sm:$0xff] }
 0x2e4   :  { %1054 = vmatpush.msra.mxu2 %v2439_v25  ;;  %1074 = vmatpush.msra.mxu3 %v2442_v27  ;;  %2747 = vst [vmem:[#allocation28_spill] sm:$0xff] %v2454_v24 }
 0x2e5   :  { %1015 = vmatpush.msrb.mxu0 %v2445_v28  ;;  %1035 = vmatpush.msra.mxu1 %v2448_v47 }
 0x2e6   :  { %1055 = vmatpush.msra.mxu2 %v2451_v48  ;;  %1075 = vmatpush.msra.mxu3 %v2454_v24 }
 0x342   :  { %v805_v25 = vpop.f32.mrf.mxu0  ;;  %v825_v23 = vpop.f32.mrf.mxu1 }
 0x343   :  { %v868_v27 = vadd.f32 %v805_v25, %v2748_v22  ;;  %v869_v20 = vadd.f32 %v825_v23, %v2749_v21 }
 0x345   :  { %v872_v19 = vmul.f32 0.5, %v868_v27  ;;  %v873_v28 = vmul.f32 0.5, %v869_v20 }
 0x347   :  { %1352 = vtanh.f32 %v872_v19 }
 0x348   :  { %1354 = vtanh.f32 %v873_v28  ;;  %v1223_v28 = vld [vmem:[#allocation6 + $0x78] sm:$0xff] }
 0x349   :  { %v845_v18 = vpop.f32.mrf.mxu2  ;;  %v865_v47 = vpop.f32.mrf.mxu3 }
 0x34a   :  { %v870_v15 = vadd.f32 %v845_v18, %v2750_v16  ;;  %v871_v48 = vadd.f32 %v865_v47, %v2751_v14 }
 0x34c   :  { %v874_v13 = vmul.f32 0.5, %v870_v15  ;;  %1356 = vtanh.f32 %v871_v48 }
 0x34d   :  { %v1353_v12 = vpop.eup %1352 }
 0x34e   :  { %v1355_v24 = vpop.eup %1354  ;;  %v878_v11 = vmul.f32 0.5, %v1353_v12  ;;  %1358 = vtanh.f32 %v874_v13 }
 0x34f   :  { %v879_v10 = vmul.f32 0.5, %v1355_v24 }
 0x350   :  { %v881_v22 = vadd.f32 0.5, %v878_v11 }
 0x351   :  { %v882_v25 = vadd.f32 0.5, %v879_v10 }
 0x352   :  { %v1357_v21 = vpop.eup %1356 }
 0x353   :  { %v885_v20 = vmul.f32 %v882_v25, %v2334_v26  ;;  %v886_v19 = vmul.f32 %v1357_v21, %v881_v22  ;;  %v2776_v22 = vld [vmem:[#allocation34_spill] sm:$0xff]  ;;  %v2777_v21 = vld [vmem:[#allocation55_spill] sm:$0xff] }
 0x354   :  { %v1359_v23 = vpop.eup %1358 }
 0x355   :  { %v2462_v27 = vadd.f32 %v886_v19, %v885_v20  ;;  %v880_v16 = vmul.f32 0.5, %v1359_v23 }
 0x357   :  { %1360 = vtanh.f32 %v2462_v27  ;;  %v883_v14 = vadd.f32 0.5, %v880_v16 }
 0x35d   :  { %v1361_v15 = vpop.eup %1360 }
 0x35e   :  { %v889_v18 = vmul.f32 %v1361_v15, %v883_v14  ;;  %v2778_v14 = vld [vmem:[#allocation56_spill] sm:$0xff] }
 0x360   :  { %910 = vmatmul.f32.vlgmr.msra.gmra.mxu0 %v889_v18  ;;  %930 = vmatmul.f32.vlgmr.msrb.gmra.mxu1 %v889_v18 }
 0x361   :  { %950 = vmatmul.f32.vlgmr.msrb.gmra.mxu2 %v889_v18  ;;  %970 = vmatmul.f32.vlgmr.msrb.gmra.mxu3 %v889_v18  ;;  %v2779_v18 = vld [vmem:[#allocation57_spill] sm:$0xff] }
 0x362   :  { %1106 = vmatpush.msra.mxu0 %v2193_v5  ;;  %1126 = vmatpush.msrb.mxu1 %v2196_v63  ;;  %v2752_v5 = vld [vmem:[#allocation37_spill] sm:$0xff]  ;;  %v2753_v63 = vld [vmem:[#allocation36_spill] sm:$0xff] }
 0x363   :  { %1146 = vmatpush.msrb.mxu2 %v2199_v57  ;;  %1166 = vmatpush.msrb.mxu3 %v2202_v61  ;;  %v2754_v57 = vld [vmem:[#allocation38_spill] sm:$0xff]  ;;  %v2755_v61 = vld [vmem:[#allocation39_spill] sm:$0xff] }
 0x364   :  { %1107 = vmatpush.msra.mxu0 %v2205_v0  ;;  %1127 = vmatpush.msrb.mxu1 %v2208_v7  ;;  %v2756_v0 = vld [vmem:[#allocation14_spill] sm:$0xff]  ;;  %v2757_v7 = vld [vmem:[#allocation13_spill] sm:$0xff] }
 0x365   :  { %1147 = vmatpush.msrb.mxu2 %v2211_v29  ;;  %1167 = vmatpush.msrb.mxu3 %v2214_v31  ;;  %v2758_v29 = vld [vmem:[#allocation19_spill] sm:$0xff]  ;;  %v2759_v31 = vld [vmem:[#allocation16_spill] sm:$0xff] }
 0x366   :  { %1108 = vmatpush.msra.mxu0 %v2217_v32  ;;  %1128 = vmatpush.msrb.mxu1 %v2220_v33  ;;  %v2760_v32 = vld [vmem:[#allocation15_spill] sm:$0xff]  ;;  %v2761_v33 = vld [vmem:[#allocation17_spill] sm:$0xff] }
 0x367   :  { %1148 = vmatpush.msrb.mxu2 %v2223_v34  ;;  %1168 = vmatpush.msrb.mxu3 %v2226_v35  ;;  %v2762_v34 = vld [vmem:[#allocation23_spill] sm:$0xff]  ;;  %v2763_v35 = vld [vmem:[#allocation20_spill] sm:$0xff] }
 0x368   :  { %1109 = vmatpush.msra.mxu0 %v2229_v36  ;;  %1129 = vmatpush.msrb.mxu1 %v2232_v37  ;;  %v2764_v36 = vld [vmem:[#allocation18_spill] sm:$0xff]  ;;  %v2765_v37 = vld [vmem:[#allocation21_spill] sm:$0xff] }
 0x369   :  { %1149 = vmatpush.msrb.mxu2 %v2235_v38  ;;  %1169 = vmatpush.msrb.mxu3 %v2238_v39  ;;  %v2766_v38 = vld [vmem:[#allocation27_spill] sm:$0xff]  ;;  %v2767_v39 = vld [vmem:[#allocation24_spill] sm:$0xff] }
 0x36a   :  { %1110 = vmatpush.msra.mxu0 %v2241_v40  ;;  %1130 = vmatpush.msrb.mxu1 %v2244_v41  ;;  %v2768_v40 = vld [vmem:[#allocation22_spill] sm:$0xff]  ;;  %v2769_v41 = vld [vmem:[#allocation25_spill] sm:$0xff] }
 0x36b   :  { %1150 = vmatpush.msrb.mxu2 %v2247_v42  ;;  %1170 = vmatpush.msrb.mxu3 %v2250_v44  ;;  %v2770_v42 = vld [vmem:[#allocation30_spill] sm:$0xff]  ;;  %v2771_v44 = vld [vmem:[#allocation28_spill] sm:$0xff] }
 0x36c   :  { %1111 = vmatpush.msra.mxu0 %v2253_v45  ;;  %1131 = vmatpush.msrb.mxu1 %v2256_v46 }
 0x36d   :  { %1151 = vmatpush.msrb.mxu2 %v2259_v58  ;;  %1171 = vmatpush.msrb.mxu3 %v2262_v54  ;;  %v2772_v58 = vld [vmem:[#allocation33_spill] sm:$0xff] }
 0x36e   :  { %1112 = vmatpush.msra.mxu0 %v2265_v56  ;;  %1132 = vmatpush.msrb.mxu1 %v2268_v60  ;;  %v2773_v56 = vld [vmem:[#allocation51_spill] sm:$0xff] }
 0x36f   :  { %1152 = vmatpush.msrb.mxu2 %v2271_v43  ;;  %1172 = vmatpush.msrb.mxu3 %v2274_v59 }
 0x370   :  { %1113 = vmatpush.msra.mxu0 %v2277_v30  ;;  %1133 = vmatpush.msrb.mxu1 %v2280_v2 }
 0x371   :  { %1153 = vmatpush.msrb.mxu2 %v2727_v17  ;;  %1173 = vmatpush.msrb.mxu3 %v2286_v3 }
 0x372   :  { %1114 = vmatpush.msra.mxu0 %v2289_v6  ;;  %1134 = vmatpush.msrb.mxu1 %v2292_v4  ;;  %v2775_v6 = vld [vmem:[#allocation54_spill] sm:$0xff] }
 0x373   :  { %1154 = vmatpush.msrb.mxu2 %v2371_v49  ;;  %1174 = vmatpush.msrb.mxu3 %v2296_v1 }
 0x374   :  { %1115 = vmatpush.msra.mxu0 %v2375_v50  ;;  %1135 = vmatpush.msrb.mxu1 %v2300_v62  ;;  %v2774_v62 = vld [vmem:[#allocation53_spill] sm:$0xff] }
 0x375   :  { %1155 = vmatpush.msrb.mxu2 %v2379_v51  ;;  %1175 = vmatpush.msrb.mxu3 %v2382_v52 }
 0x376   :  { %1116 = vmatpush.msra.mxu0 %v2385_v55  ;;  %1136 = vmatpush.msrb.mxu1 %v2388_v53 }
 0x377   :  { %1156 = vmatpush.msrb.mxu2 %v2391_v8  ;;  %1176 = vmatpush.msrb.mxu3 %v2394_v9 }
 0x378   :  { %1117 = vmatpush.msra.mxu0 %v2752_v5  ;;  %1137 = vmatpush.msrb.mxu1 %v2753_v63 }
 0x379   :  { %1157 = vmatpush.msrb.mxu2 %v2754_v57  ;;  %1177 = vmatpush.msrb.mxu3 %v2755_v61 }
 0x37a   :  { %1118 = vmatpush.msra.mxu0 %v2756_v0  ;;  %1138 = vmatpush.msrb.mxu1 %v2757_v7 }
 0x37b   :  { %1158 = vmatpush.msrb.mxu2 %v2758_v29  ;;  %1178 = vmatpush.msrb.mxu3 %v2759_v31 }
 0x37c   :  { %1119 = vmatpush.msra.mxu0 %v2760_v32  ;;  %1139 = vmatpush.msrb.mxu1 %v2761_v33 }
 0x37d   :  { %1159 = vmatpush.msrb.mxu2 %v2762_v34  ;;  %1179 = vmatpush.msrb.mxu3 %v2763_v35 }
 0x37e   :  { %1120 = vmatpush.msra.mxu0 %v2764_v36  ;;  %1140 = vmatpush.msrb.mxu1 %v2765_v37 }
 0x37f   :  { %1160 = vmatpush.msrb.mxu2 %v2766_v38  ;;  %1180 = vmatpush.msrb.mxu3 %v2767_v39 }
 0x380   :  { %1121 = vmatpush.msra.mxu0 %v2768_v40  ;;  %1141 = vmatpush.msrb.mxu1 %v2769_v41  ;;  %v1222_v41 = vld [vmem:[#allocation6 + $0x70] sm:$0xff] }
 0x381   :  { %1161 = vmatpush.msrb.mxu2 %v2770_v42  ;;  %1181 = vmatpush.msrb.mxu3 %v2771_v44  ;;  %v1221_v42 = vld [vmem:[#allocation6 + $0x68] sm:$0xff]  ;;  %v1220_v44 = vld [vmem:[#allocation6 + $0x60] sm:$0xff] }
 0x3dd   :  { %v911_v45 = vpop.f32.mrf.mxu0  ;;  %v931_v46 = vpop.f32.mrf.mxu1 }
 0x3de   :  { %v974_v54 = vadd.f32 %v911_v45, %v2772_v58  ;;  %v975_v60 = vadd.f32 %v931_v46, %v2773_v56  ;;  %v1219_v45 = vld [vmem:[#allocation6 + $0x58] sm:$0xff]  ;;  %v1218_v46 = vld [vmem:[#allocation6 + $0x50] sm:$0xff]  ;;  %v1217_v58 = vld [vmem:[#allocation6 + $0x48] sm:$0xff] }
 0x3df   :  { %v1215_v56 = vld [vmem:[#allocation6 + $0x38] sm:$0xff] }
 0x3e0   :  { %v978_v43 = vmul.f32 0.5, %v974_v54  ;;  %v979_v59 = vmul.f32 0.5, %v975_v60  ;;  %v1216_v54 = vld [vmem:[#allocation6 + $0x40] sm:$0xff]  ;;  %v1214_v60 = vld [vmem:[#allocation6 + $0x30] sm:$0xff] }
 0x3e2   :  { %1362 = vtanh.f32 %v978_v43  ;;  %v1213_v43 = vld [vmem:[#allocation6 + $0x28] sm:$0xff] }
 0x3e3   :  { %1364 = vtanh.f32 %v979_v59  ;;  %v1212_v59 = vld [vmem:[#allocation6 + $0x20] sm:$0xff] }
 0x3e4   :  { %v951_v30 = vpop.f32.mrf.mxu2  ;;  %v971_v2 = vpop.f32.mrf.mxu3 }
 0x3e5   :  { %v976_v3 = vadd.f32 %v951_v30, %v2774_v62  ;;  %v977_v4 = vadd.f32 %v971_v2, %v2775_v6  ;;  %v1211_v30 = vld [vmem:[#allocation6 + $0x18] sm:$0xff]  ;;  %v1210_v2 = vld [vmem:[#allocation6 + $0x10] sm:$0xff]  ;;  %v1209_v62 = vld [vmem:[#allocation6 + $0x8] sm:$0xff] }
 0x3e7   :  { %v980_v1 = vmul.f32 0.5, %v976_v3  ;;  %1366 = vtanh.f32 %v977_v4  ;;  %v1208_v3 = vld [vmem:[#allocation6] sm:$0xff] }
 0x3e8   :  { %v1363_v26 = vpop.eup %1362 }
 0x3e9   :  { %v1365_v17 = vpop.eup %1364  ;;  %v984_v49 = vmul.f32 0.5, %v1363_v26  ;;  %1368 = vtanh.f32 %v980_v1  ;;  %v2780_v1 = vld [vmem:[#allocation35_spill] sm:$0xff] }
 0x3ea   :  { %v985_v50 = vmul.f32 0.5, %v1365_v17  ;;  %v2781_v17 = vld [vmem:[#allocation58_spill] sm:$0xff] }
 0x3eb   :  { %v987_v51 = vadd.f32 0.5, %v984_v49 }
 0x3ec   :  { %v988_v52 = vadd.f32 0.5, %v985_v50 }
 0x3ed   :  { %v1367_v55 = vpop.eup %1366 }
 0x3ee   :  { %v991_v53 = vmul.f32 %v988_v52, %v2462_v27  ;;  %v992_v8 = vmul.f32 %v1367_v55, %v987_v51 }
 0x3ef   :  { %v1369_v9 = vpop.eup %1368 }
 0x3f0   :  { %v993_v10 = vadd.f32 %v992_v8, %v991_v53  ;;  %v986_v11 = vmul.f32 0.5, %v1369_v9  ;;  %v2782_v53 = vld [vmem:[#allocation59_spill] sm:$0xff]  ;;  %v2783_v9 = vld [vmem:[#allocation60_spill] sm:$0xff] }
 0x3f2   :  { %1370 = vtanh.f32 %v993_v10  ;;  %v989_v12 = vadd.f32 0.5, %v986_v11 }
 0x3f8   :  { %v1371_v13 = vpop.eup %1370 }
 0x3f9   :  { %v995_v24 = vmul.f32 %v1371_v13, %v989_v12 }
 0x3fb   :  { %1016 = vmatmul.f32.vlgmr.msrb.gmra.mxu0 %v995_v24  ;;  %1036 = vmatmul.f32.vlgmr.msra.gmra.mxu1 %v995_v24 }
 0x3fc   :  { %1056 = vmatmul.f32.vlgmr.msra.gmra.mxu2 %v995_v24  ;;  %1076 = vmatmul.f32.vlgmr.msra.gmra.mxu3 %v995_v24 }
 0x3fd   :  { %1226 = vmatpush.msrb.mxu0 %v1223_v28 }
 0x3ff   :  { %1227 = vmatpush.msrb.mxu0 %v1222_v41 }
 0x401   :  { %1228 = vmatpush.msrb.mxu0 %v1221_v42 }
 0x403   :  { %1229 = vmatpush.msrb.mxu0 %v1220_v44 }
 0x405   :  { %1230 = vmatpush.msrb.mxu0 %v1219_v45 }
 0x407   :  { %1231 = vmatpush.msrb.mxu0 %v1218_v46 }
 0x409   :  { %1232 = vmatpush.msrb.mxu0 %v1217_v58 }
 0x40b   :  { %1233 = vmatpush.msrb.mxu0 %v1216_v54 }
 0x40d   :  { %1234 = vmatpush.msrb.mxu0 %v1215_v56 }
 0x40f   :  { %1235 = vmatpush.msrb.mxu0 %v1214_v60 }
 0x411   :  { %1236 = vmatpush.msrb.mxu0 %v1213_v43 }
 0x413   :  { %1237 = vmatpush.msrb.mxu0 %v1212_v59 }
 0x415   :  { %1238 = vmatpush.msrb.mxu0 %v1211_v30 }
 0x417   :  { %1239 = vmatpush.msrb.mxu0 %v1210_v2 }
 0x419   :  { %1240 = vmatpush.msrb.mxu0 %v1209_v62 }
 0x41b   :  { %1241 = vmatpush.msrb.mxu0 %v1208_v3 }
 0x478   :  { %v1017_v47 = vpop.f32.mrf.mxu0  ;;  %v1037_v48 = vpop.f32.mrf.mxu1 }
 0x479   :  { %v1080_v25 = vadd.f32 %v1017_v47, %v2776_v22  ;;  %v1081_v20 = vadd.f32 %v1037_v48, %v2777_v21 }
 0x47b   :  { %v1084_v19 = vmul.f32 0.5, %v1080_v25  ;;  %v1085_v23 = vmul.f32 0.5, %v1081_v20 }
 0x47d   :  { %1372 = vtanh.f32 %v1084_v19 }
 0x47e   :  { %1374 = vtanh.f32 %v1085_v23 }
 0x47f   :  { %v1057_v27 = vpop.f32.mrf.mxu2  ;;  %v1077_v16 = vpop.f32.mrf.mxu3 }
 0x480   :  { %v1082_v15 = vadd.f32 %v1057_v27, %v2778_v14  ;;  %v1083_v5 = vadd.f32 %v1077_v16, %v2779_v18 }
 0x482   :  { %v1086_v63 = vmul.f32 0.5, %v1082_v15  ;;  %1376 = vtanh.f32 %v1083_v5  ;;  %v1224_v15 = vld [vmem:[#allocation6 + $0x80] sm:$0xff] }
 0x483   :  { %v1373_v57 = vpop.eup %1372  ;;  %v1225_v18 = vperm.slane %v1224_v15, 0 }
 0x484   :  { %v1375_v61 = vpop.eup %1374  ;;  %v1090_v0 = vmul.f32 0.5, %v1373_v57  ;;  %1378 = vtanh.f32 %v1086_v63 }
 0x485   :  { %v1091_v7 = vmul.f32 0.5, %v1375_v61 }
 0x486   :  { %v1093_v29 = vadd.f32 0.5, %v1090_v0 }
 0x487   :  { %v1094_v31 = vadd.f32 0.5, %v1091_v7 }
 0x488   :  { %v1377_v32 = vpop.eup %1376 }
 0x489   :  { %v1097_v33 = vmul.f32 %v1094_v31, %v993_v10  ;;  %v1098_v34 = vmul.f32 %v1377_v32, %v1093_v29 }
 0x48a   :  { %v1379_v35 = vpop.eup %1378 }
 0x48b   :  { %v1099_v36 = vadd.f32 %v1098_v34, %v1097_v33  ;;  %v1092_v37 = vmul.f32 0.5, %v1379_v35 }
 0x48d   :  { %1380 = vtanh.f32 %v1099_v36  ;;  %v1095_v38 = vadd.f32 0.5, %v1092_v37 }
 0x493   :  { %v1381_v39 = vpop.eup %1380 }
 0x494   :  { %v1101_v40 = vmul.f32 %v1381_v39, %v1095_v38 }
 0x496   :  { %1122 = vmatmul.f32.vlgmr.msra.gmra.mxu0 %v1101_v40  ;;  %1142 = vmatmul.f32.vlgmr.msrb.gmra.mxu1 %v1101_v40 }
 0x497   :  { %1162 = vmatmul.f32.vlgmr.msrb.gmra.mxu2 %v1101_v40  ;;  %1182 = vmatmul.f32.vlgmr.msrb.gmra.mxu3 %v1101_v40 }
 0x513   :  { %v1123_v6 = vpop.f32.mrf.mxu0  ;;  %v1143_v4 = vpop.f32.mrf.mxu1 }
 0x514   :  { %v1186_v26 = vadd.f32 %v1123_v6, %v2780_v1  ;;  %v1187_v49 = vadd.f32 %v1143_v4, %v2781_v17 }
 0x516   :  { %v1190_v50 = vmul.f32 0.5, %v1186_v26  ;;  %v1191_v51 = vmul.f32 0.5, %v1187_v49 }
 0x518   :  { %1382 = vtanh.f32 %v1190_v50 }
 0x519   :  { %1384 = vtanh.f32 %v1191_v51 }
 0x51a   :  { %v1163_v52 = vpop.f32.mrf.mxu2  ;;  %v1183_v55 = vpop.f32.mrf.mxu3 }
 0x51b   :  { %v1188_v8 = vadd.f32 %v1163_v52, %v2782_v53  ;;  %v1189_v10 = vadd.f32 %v1183_v55, %v2783_v9 }
 0x51d   :  { %v1192_v11 = vmul.f32 0.5, %v1188_v8  ;;  %1386 = vtanh.f32 %v1189_v10 }
 0x51e   :  { %v1383_v12 = vpop.eup %1382 }
 0x51f   :  { %v1385_v13 = vpop.eup %1384  ;;  %v1196_v24 = vmul.f32 0.5, %v1383_v12  ;;  %1388 = vtanh.f32 %v1192_v11 }
 0x520   :  { %v1197_v28 = vmul.f32 0.5, %v1385_v13 }
 0x521   :  { %v1199_v47 = vadd.f32 0.5, %v1196_v24 }
 0x522   :  { %v1200_v48 = vadd.f32 0.5, %v1197_v28 }
 0x523   :  { %v1387_v22 = vpop.eup %1386 }
 0x524   :  { %v1203_v25 = vmul.f32 %v1200_v48, %v1099_v36  ;;  %v1204_v21 = vmul.f32 %v1387_v22, %v1199_v47 }
 0x525   :  { %v1389_v20 = vpop.eup %1388 }
 0x526   :  { %v1205_v19 = vadd.f32 %v1204_v21, %v1203_v25  ;;  %v1198_v23 = vmul.f32 0.5, %v1389_v20 }
 0x528   :  { %1390 = vtanh.f32 %v1205_v19  ;;  %v1201_v27 = vadd.f32 0.5, %v1198_v23 }
 0x52e   :  { %v1391_v16 = vpop.eup %1390 }
 0x52f   :  { %v1207_v14 = vmul.f32 %v1391_v16, %v1201_v27 }
 0x531   :  { %1242 = vmatmul.f32.vlgmr.msrb.gmra.mxu0 %v1207_v14 }
 0x5ae   :  { %v1243_v5 = vpop.f32.mrf.mxu0 }
 0x5af   :  { %v1244_v63 = vadd.f32 %v1243_v5, %v1225_v18 }
 0x5b1   :  { %1246 = vst [vmem:[#allocation8] sm:$0xff] %v1244_v63 }
 0x5b2   :  { %1257 = dma.vmem_to_hbm [thread:$0]  %s1253_s24, 128, %s1255_s27, [#allocation5]  }
 0x5b3   :  { %1532 = dma.done.wait [#allocation5], 128  }
 0x5b4   :  { %1533 = vsyncadd [#allocation5], 4294967168 }
 0x5b5   :  { %1262 = vsyncpa [#allocation4], 1 }
 0x5b6   :  { %1263 = vsyncpa [#allocation7], 1 }
 0x5b7   :  { %1264 = vsyncpa [#allocation5], 1 }

</bundles_post_ra>
